<compile_context>
chip_gen: v6e
topology: v6e:2x2x1
jax: 0.10.0
libtpu: 0.0.40
codegen_flags: <defaults>
</compile_context>

<pallas_src>
import jax
import jax.numpy as jnp
from jax.experimental import pallas as pl
from jax.experimental.pallas import tpu as pltpu

DIMS = [28 * 28, 256, 64, 32, 64, 256, 28 * 28]   # layer widths of encoder+decoder
SUBLANE_BF16 = 16   # bf16 packs 16 rows per sublane group -> row tiles are multiples of 16


def _round_up(x, m):
    return ((x + m - 1) // m) * m


def _autoencoder_kernel(x_ref,
                        w1, b1, w2, b2, w3, b3,
                        w4, b4, w5, b5, w6, b6,
                        o_ref):
    """Fused forward: 6 matmuls (bf16 MXU inputs, f32 accumulate) + fused bias/ReLU epilogues."""

    def layer(h_bf16, w_ref, b_ref, *, relu):
        # MXU matmul with f32 accumulation; fused (acc + b) / max(.,0) epilogue on the VPU.
        acc = jnp.dot(h_bf16, w_ref[...], preferred_element_type=jnp.float32)
        acc = acc + b_ref[...]          # (1, N) bias broadcasts over the M tile
        if relu:
            acc = jnp.maximum(acc, 0.0)
        return acc

    # f32 -> bf16 cast done here (cheap VPU work hidden under the input DMA) instead of
    # as a separate XLA pad/cast pass over x in HBM.
    h = x_ref[...].astype(jnp.bfloat16)                          # (M, 784)
    # encoder
    h = layer(h, w1, b1, relu=True).astype(jnp.bfloat16)         # (M, 256)
    h = layer(h, w2, b2, relu=True).astype(jnp.bfloat16)         # (M, 64)
    h = layer(h, w3, b3, relu=True).astype(jnp.bfloat16)         # (M, 32)
    # decoder
    h = layer(h, w4, b4, relu=True).astype(jnp.bfloat16)         # (M, 64)
    h = layer(h, w5, b5, relu=True).astype(jnp.bfloat16)         # (M, 256)
    out = layer(h, w6, b6, relu=False)                           # (M, 784) f32 accumulator
    o_ref[...] = out.astype(o_ref.dtype)


def init_params(key):
    """Deterministic PyTorch-style init: U(-1/sqrt(fan_in), 1/sqrt(fan_in)), f32."""
    params = []
    for i in range(6):
        fan_in, fan_out = DIMS[i], DIMS[i + 1]
        key, kw, kb = jax.random.split(key, 3)
        bound = 1.0 / jnp.sqrt(jnp.float32(fan_in))
        w = jax.random.uniform(kw, (fan_in, fan_out), jnp.float32, -bound, bound)
        b = jax.random.uniform(kb, (1, fan_out), jnp.float32, -bound, bound)
        params += [w, b]
    return params


def prepare_params(params):
    """One-time prep: weights -> bf16 (MXU inputs); biases stay f32 (epilogue runs in f32).

    No feature-dim padding anywhere: W1 keeps 784 rows (x arrives unpadded) and W6/b6 keep
    784 columns (output is stored unpadded).
    """
    prepped = []
    for i in range(6):
        w, b = params[2 * i], params[2 * i + 1]
        prepped += [w.astype(jnp.bfloat16), b.astype(jnp.float32)]
    return prepped


def autoencoder_forward(x, prepped_params, *, block_batch=512,
                        out_dtype=jnp.bfloat16, min_row_tiles=2):
    """x: (B, 784) float32. prepped_params from prepare_params().

    Returns (B, 784) in out_dtype (bf16 by default for halved output HBM traffic;
    pass out_dtype=jnp.float32 for exact PyTorch output-dtype parity).
    """
    B, D = x.shape
    assert D == DIMS[0]

    # Balanced batch tiles: ~block_batch rows each, rounded to a multiple of 16 (bf16
    # sublane packing). Guarantee >= min_row_tiles tiles when B allows so the "parallel"
    # batch axis can shard across both TensorCores on v7x; avoids the near-worst-case
    # padding of round_up(B, block_batch) for batches just above a tile multiple.
    n_tiles = pl.cdiv(B, block_batch)
    if B >= 2 * SUBLANE_BF16:
        n_tiles = max(n_tiles, min_row_tiles)
    bb = _round_up(pl.cdiv(B, n_tiles), SUBLANE_BF16)
    grid_m = pl.cdiv(B, bb)
    B_pad = grid_m * bb

    # Only a (small) ragged batch remainder is ever padded; when B % bb == 0 this is a
    # no-op. The feature dim stays at 784 (full-extent last dim in the BlockSpec).
    if B_pad != B:
        x = jnp.pad(x, ((0, B_pad - B), (0, 0)))

    # Full-array blocks for every weight/bias (small, resident in VMEM every step).
    # TODO(synk): params are still double-buffered by the default pipeline; pl.Buffered(1)
    # and/or folding the 6 biases into one buffer would free ~1 MiB VMEM (low priority).
    param_specs = [pl.BlockSpec(p.shape, lambda i: (0, 0)) for p in prepped_params]

    in_specs = [pl.BlockSpec((bb, DIMS[0]), lambda i: (i, 0))] + param_specs
    out_spec = pl.BlockSpec((bb, DIMS[-1]), lambda i: (i, 0))

    # Advisory cost estimate so XLA schedules producers/consumers around the call.
    flops = 2 * B_pad * sum(DIMS[i] * DIMS[i + 1] for i in range(6))
    param_bytes = sum(int(p.size) * p.dtype.itemsize for p in prepped_params)
    bytes_accessed = (int(x.size) * x.dtype.itemsize
                      + B_pad * DIMS[-1] * jnp.dtype(out_dtype).itemsize
                      + param_bytes)

    out = pl.pallas_call(
        _autoencoder_kernel,
        out_shape=jax.ShapeDtypeStruct((B_pad, DIMS[-1]), out_dtype),
        grid=(grid_m,),
        in_specs=in_specs,
        out_specs=out_spec,
        compiler_params=pltpu.CompilerParams(
            dimension_semantics=("parallel",),        # batch axis shards across TCs (v7x)
            vmem_limit_bytes=48 * 1024 * 1024,        # headroom for large bb on v7x (64 MiB phys)
        ),
        cost_estimate=pl.CostEstimate(
            flops=flops, transcendentals=0, bytes_accessed=bytes_accessed),
    )(x, *prepped_params)

    return out if B_pad == B else out[:B]


def _reference_forward(x, params):
    """Plain-JAX f32 reference for correctness checking."""
    h = x
    for i in range(6):
        w, b = params[2 * i], params[2 * i + 1]
        h = h @ w + b
        if i < 5:
            h = jnp.maximum(h, 0.0)
    return h


if __name__ == "__main__":
    key = jax.random.PRNGKey(0)
    key, kx = jax.random.split(key)

    # Small, deliberately ragged batch (not a multiple of 16) to exercise the balanced-tile
    # + remainder-padding path; with the defaults this still yields a 2-step grid.
    batch = 44
    x = jax.random.normal(kx, (batch, 28 * 28), dtype=jnp.float32)

    params = init_params(key)
    prepped = prepare_params(params)

    out_bf16 = autoencoder_forward(x, prepped)                         # perf default (bf16 out)
    out_f32 = autoencoder_forward(x, prepped, out_dtype=jnp.float32)   # PyTorch-parity dtype
    out_bf16, out_f32 = jax.block_until_ready((out_bf16, out_f32))

    ref = _reference_forward(x, params)
    assert out_bf16.shape == (batch, 28 * 28) and out_bf16.dtype == jnp.bfloat16
    assert out_f32.shape == (batch, 28 * 28) and out_f32.dtype == jnp.float32
    # bf16 matmul inputs (and optionally bf16 output store) vs f32 reference: loosened tol.
    assert jnp.allclose(out_f32, ref, atol=5e-2, rtol=5e-2), "f32-out mismatch vs reference"
    assert jnp.allclose(out_bf16.astype(jnp.float32), ref, atol=5e-2, rtol=5e-2), \
        "bf16-out mismatch vs reference"

    print("KERNEL_OK")
</pallas_src>

<mosaic_0001>
module attributes {stable_mosaic.version = 11 : i64} {
  func.func @_autoencoder_kernel(%arg0: i32, %arg1: memref<32x784xf32, #tpu.memory_space<vmem>>, %arg2: memref<784x256xbf16, #tpu.memory_space<vmem>>, %arg3: memref<1x256xf32, #tpu.memory_space<vmem>>, %arg4: memref<256x64xbf16, #tpu.memory_space<vmem>>, %arg5: memref<1x64xf32, #tpu.memory_space<vmem>>, %arg6: memref<64x32xbf16, #tpu.memory_space<vmem>>, %arg7: memref<1x32xf32, #tpu.memory_space<vmem>>, %arg8: memref<32x64xbf16, #tpu.memory_space<vmem>>, %arg9: memref<1x64xf32, #tpu.memory_space<vmem>>, %arg10: memref<64x256xbf16, #tpu.memory_space<vmem>>, %arg11: memref<1x256xf32, #tpu.memory_space<vmem>>, %arg12: memref<256x784xbf16, #tpu.memory_space<vmem>>, %arg13: memref<1x784xf32, #tpu.memory_space<vmem>>, %arg14: memref<32x784xbf16, #tpu.memory_space<vmem>>) attributes {dimension_semantics = [#tpu.dimension_semantics<parallel>], iteration_bounds = array<i64: 2>, scalar_prefetch = 0 : i64, scratch_operands = 0 : i64, tpu.core_type = #tpu.core_type<tc>, window_params = [{transform_indices = @transform_0, window_bounds = array<i64: 32, 784>}, {pipeline_mode = #tpu.pipeline_mode<synchronous>, transform_indices = @transform_1, window_bounds = array<i64: 784, 256>}, {pipeline_mode = #tpu.pipeline_mode<synchronous>, transform_indices = @transform_2, window_bounds = array<i64: 1, 256>}, {pipeline_mode = #tpu.pipeline_mode<synchronous>, transform_indices = @transform_3, window_bounds = array<i64: 256, 64>}, {pipeline_mode = #tpu.pipeline_mode<synchronous>, transform_indices = @transform_4, window_bounds = array<i64: 1, 64>}, {pipeline_mode = #tpu.pipeline_mode<synchronous>, transform_indices = @transform_5, window_bounds = array<i64: 64, 32>}, {pipeline_mode = #tpu.pipeline_mode<synchronous>, transform_indices = @transform_6, window_bounds = array<i64: 1, 32>}, {pipeline_mode = #tpu.pipeline_mode<synchronous>, transform_indices = @transform_7, window_bounds = array<i64: 32, 64>}, {pipeline_mode = #tpu.pipeline_mode<synchronous>, transform_indices = @transform_8, window_bounds = array<i64: 1, 64>}, {pipeline_mode = #tpu.pipeline_mode<synchronous>, transform_indices = @transform_9, window_bounds = array<i64: 64, 256>}, {pipeline_mode = #tpu.pipeline_mode<synchronous>, transform_indices = @transform_10, window_bounds = array<i64: 1, 256>}, {pipeline_mode = #tpu.pipeline_mode<synchronous>, transform_indices = @transform_11, window_bounds = array<i64: 256, 784>}, {pipeline_mode = #tpu.pipeline_mode<synchronous>, transform_indices = @transform_12, window_bounds = array<i64: 1, 784>}, {transform_indices = @transform_13, window_bounds = array<i64: 32, 784>}]} {
    %c0 = arith.constant 0 : index
    %c0_0 = arith.constant 0 : index
    %0 = vector.load %arg1[%c0, %c0_0] : memref<32x784xf32, #tpu.memory_space<vmem>>, vector<32x784xf32>
    %1 = arith.truncf %0 : vector<32x784xf32> to vector<32x784xbf16>
    %c0_1 = arith.constant 0 : index
    %c0_2 = arith.constant 0 : index
    %2 = vector.load %arg2[%c0_1, %c0_2] : memref<784x256xbf16, #tpu.memory_space<vmem>>, vector<784x256xbf16>
    %cst = arith.constant dense<0.000000e+00> : vector<32x256xf32>
    %3 = tpu.matmul %1, %2, %cst {dimension_numbers = #tpu.dot_dimension_numbers<[1], [0], [0], [1], [0, 0, 1, 1], [], []>} : vector<32x784xbf16>, vector<784x256xbf16>, vector<32x256xf32> -> vector<32x256xf32>
    %c0_3 = arith.constant 0 : index
    %c0_4 = arith.constant 0 : index
    %4 = vector.load %arg3[%c0_3, %c0_4] : memref<1x256xf32, #tpu.memory_space<vmem>>, vector<1x256xf32>
    %5 = vector.broadcast %4 : vector<1x256xf32> to vector<32x256xf32>
    %6 = arith.addf %3, %5 : vector<32x256xf32>
    %cst_5 = arith.constant 0.000000e+00 : f32
    %7 = vector.broadcast %cst_5 : f32 to vector<32x256xf32>
    %8 = arith.maximumf %6, %7 : vector<32x256xf32>
    %9 = arith.truncf %8 : vector<32x256xf32> to vector<32x256xbf16>
    %c0_6 = arith.constant 0 : index
    %c0_7 = arith.constant 0 : index
    %10 = vector.load %arg4[%c0_6, %c0_7] : memref<256x64xbf16, #tpu.memory_space<vmem>>, vector<256x64xbf16>
    %cst_8 = arith.constant dense<0.000000e+00> : vector<32x64xf32>
    %11 = tpu.matmul %9, %10, %cst_8 {dimension_numbers = #tpu.dot_dimension_numbers<[1], [0], [0], [1], [0, 0, 1, 1], [], []>} : vector<32x256xbf16>, vector<256x64xbf16>, vector<32x64xf32> -> vector<32x64xf32>
    %c0_9 = arith.constant 0 : index
    %c0_10 = arith.constant 0 : index
    %12 = vector.load %arg5[%c0_9, %c0_10] : memref<1x64xf32, #tpu.memory_space<vmem>>, vector<1x64xf32>
    %13 = vector.broadcast %12 : vector<1x64xf32> to vector<32x64xf32>
    %14 = arith.addf %11, %13 : vector<32x64xf32>
    %cst_11 = arith.constant 0.000000e+00 : f32
    %15 = vector.broadcast %cst_11 : f32 to vector<32x64xf32>
    %16 = arith.maximumf %14, %15 : vector<32x64xf32>
    %17 = arith.truncf %16 : vector<32x64xf32> to vector<32x64xbf16>
    %c0_12 = arith.constant 0 : index
    %c0_13 = arith.constant 0 : index
    %18 = vector.load %arg6[%c0_12, %c0_13] : memref<64x32xbf16, #tpu.memory_space<vmem>>, vector<64x32xbf16>
    %cst_14 = arith.constant dense<0.000000e+00> : vector<32x32xf32>
    %19 = tpu.matmul %17, %18, %cst_14 {dimension_numbers = #tpu.dot_dimension_numbers<[1], [0], [0], [1], [0, 0, 1, 1], [], []>} : vector<32x64xbf16>, vector<64x32xbf16>, vector<32x32xf32> -> vector<32x32xf32>
    %c0_15 = arith.constant 0 : index
    %c0_16 = arith.constant 0 : index
    %20 = vector.load %arg7[%c0_15, %c0_16] : memref<1x32xf32, #tpu.memory_space<vmem>>, vector<1x32xf32>
    %21 = vector.broadcast %20 : vector<1x32xf32> to vector<32x32xf32>
    %22 = arith.addf %19, %21 : vector<32x32xf32>
    %cst_17 = arith.constant 0.000000e+00 : f32
    %23 = vector.broadcast %cst_17 : f32 to vector<32x32xf32>
    %24 = arith.maximumf %22, %23 : vector<32x32xf32>
    %25 = arith.truncf %24 : vector<32x32xf32> to vector<32x32xbf16>
    %c0_18 = arith.constant 0 : index
    %c0_19 = arith.constant 0 : index
    %26 = vector.load %arg8[%c0_18, %c0_19] : memref<32x64xbf16, #tpu.memory_space<vmem>>, vector<32x64xbf16>
    %cst_20 = arith.constant dense<0.000000e+00> : vector<32x64xf32>
    %27 = tpu.matmul %25, %26, %cst_20 {dimension_numbers = #tpu.dot_dimension_numbers<[1], [0], [0], [1], [0, 0, 1, 1], [], []>} : vector<32x32xbf16>, vector<32x64xbf16>, vector<32x64xf32> -> vector<32x64xf32>
    %c0_21 = arith.constant 0 : index
    %c0_22 = arith.constant 0 : index
    %28 = vector.load %arg9[%c0_21, %c0_22] : memref<1x64xf32, #tpu.memory_space<vmem>>, vector<1x64xf32>
    %29 = vector.broadcast %28 : vector<1x64xf32> to vector<32x64xf32>
    %30 = arith.addf %27, %29 : vector<32x64xf32>
    %cst_23 = arith.constant 0.000000e+00 : f32
    %31 = vector.broadcast %cst_23 : f32 to vector<32x64xf32>
    %32 = arith.maximumf %30, %31 : vector<32x64xf32>
    %33 = arith.truncf %32 : vector<32x64xf32> to vector<32x64xbf16>
    %c0_24 = arith.constant 0 : index
    %c0_25 = arith.constant 0 : index
    %34 = vector.load %arg10[%c0_24, %c0_25] : memref<64x256xbf16, #tpu.memory_space<vmem>>, vector<64x256xbf16>
    %cst_26 = arith.constant dense<0.000000e+00> : vector<32x256xf32>
    %35 = tpu.matmul %33, %34, %cst_26 {dimension_numbers = #tpu.dot_dimension_numbers<[1], [0], [0], [1], [0, 0, 1, 1], [], []>} : vector<32x64xbf16>, vector<64x256xbf16>, vector<32x256xf32> -> vector<32x256xf32>
    %c0_27 = arith.constant 0 : index
    %c0_28 = arith.constant 0 : index
    %36 = vector.load %arg11[%c0_27, %c0_28] : memref<1x256xf32, #tpu.memory_space<vmem>>, vector<1x256xf32>
    %37 = vector.broadcast %36 : vector<1x256xf32> to vector<32x256xf32>
    %38 = arith.addf %35, %37 : vector<32x256xf32>
    %cst_29 = arith.constant 0.000000e+00 : f32
    %39 = vector.broadcast %cst_29 : f32 to vector<32x256xf32>
    %40 = arith.maximumf %38, %39 : vector<32x256xf32>
    %41 = arith.truncf %40 : vector<32x256xf32> to vector<32x256xbf16>
    %c0_30 = arith.constant 0 : index
    %c0_31 = arith.constant 0 : index
    %42 = vector.load %arg12[%c0_30, %c0_31] : memref<256x784xbf16, #tpu.memory_space<vmem>>, vector<256x784xbf16>
    %cst_32 = arith.constant dense<0.000000e+00> : vector<32x784xf32>
    %43 = tpu.matmul %41, %42, %cst_32 {dimension_numbers = #tpu.dot_dimension_numbers<[1], [0], [0], [1], [0, 0, 1, 1], [], []>} : vector<32x256xbf16>, vector<256x784xbf16>, vector<32x784xf32> -> vector<32x784xf32>
    %c0_33 = arith.constant 0 : index
    %c0_34 = arith.constant 0 : index
    %44 = vector.load %arg13[%c0_33, %c0_34] : memref<1x784xf32, #tpu.memory_space<vmem>>, vector<1x784xf32>
    %45 = vector.broadcast %44 : vector<1x784xf32> to vector<32x784xf32>
    %46 = arith.addf %43, %45 : vector<32x784xf32>
    %47 = arith.truncf %46 : vector<32x784xf32> to vector<32x784xbf16>
    %c0_35 = arith.constant 0 : index
    %c0_36 = arith.constant 0 : index
    %48 = vector.load %arg14[%c0_35, %c0_36] : memref<32x784xbf16, #tpu.memory_space<vmem>>, vector<32x784xbf16>
    tpu.vector_store %arg14[%c0_35, %c0_36], %47 {strides = array<i32>} : memref<32x784xbf16, #tpu.memory_space<vmem>>, vector<32x784xbf16>,
    return
  }
  func.func @transform_0(%arg0: i32) -> (i32, i32) {
    %c0_i32 = arith.constant 0 : i32
    %c0_i32_0 = arith.constant 0 : i32
    return %arg0, %c0_i32 : i32, i32
  }
  func.func @transform_1(%arg0: i32) -> (i32, i32) {
    %c0_i32 = arith.constant 0 : i32
    %c0_i32_0 = arith.constant 0 : i32
    %c0_i32_1 = arith.constant 0 : i32
    return %c0_i32, %c0_i32_0 : i32, i32
  }
  func.func @transform_2(%arg0: i32) -> (i32, i32) {
    %c0_i32 = arith.constant 0 : i32
    %c0_i32_0 = arith.constant 0 : i32
    %c0_i32_1 = arith.constant 0 : i32
    return %c0_i32, %c0_i32_0 : i32, i32
  }
  func.func @transform_3(%arg0: i32) -> (i32, i32) {
    %c0_i32 = arith.constant 0 : i32
    %c0_i32_0 = arith.constant 0 : i32
    %c0_i32_1 = arith.constant 0 : i32
    return %c0_i32, %c0_i32_0 : i32, i32
  }
  func.func @transform_4(%arg0: i32) -> (i32, i32) {
    %c0_i32 = arith.constant 0 : i32
    %c0_i32_0 = arith.constant 0 : i32
    %c0_i32_1 = arith.constant 0 : i32
    return %c0_i32, %c0_i32_0 : i32, i32
  }
  func.func @transform_5(%arg0: i32) -> (i32, i32) {
    %c0_i32 = arith.constant 0 : i32
    %c0_i32_0 = arith.constant 0 : i32
    %c0_i32_1 = arith.constant 0 : i32
    return %c0_i32, %c0_i32_0 : i32, i32
  }
  func.func @transform_6(%arg0: i32) -> (i32, i32) {
    %c0_i32 = arith.constant 0 : i32
    %c0_i32_0 = arith.constant 0 : i32
    %c0_i32_1 = arith.constant 0 : i32
    return %c0_i32, %c0_i32_0 : i32, i32
  }
  func.func @transform_7(%arg0: i32) -> (i32, i32) {
    %c0_i32 = arith.constant 0 : i32
    %c0_i32_0 = arith.constant 0 : i32
    %c0_i32_1 = arith.constant 0 : i32
    return %c0_i32, %c0_i32_0 : i32, i32
  }
  func.func @transform_8(%arg0: i32) -> (i32, i32) {
    %c0_i32 = arith.constant 0 : i32
    %c0_i32_0 = arith.constant 0 : i32
    %c0_i32_1 = arith.constant 0 : i32
    return %c0_i32, %c0_i32_0 : i32, i32
  }
  func.func @transform_9(%arg0: i32) -> (i32, i32) {
    %c0_i32 = arith.constant 0 : i32
    %c0_i32_0 = arith.constant 0 : i32
    %c0_i32_1 = arith.constant 0 : i32
    return %c0_i32, %c0_i32_0 : i32, i32
  }
  func.func @transform_10(%arg0: i32) -> (i32, i32) {
    %c0_i32 = arith.constant 0 : i32
    %c0_i32_0 = arith.constant 0 : i32
    %c0_i32_1 = arith.constant 0 : i32
    return %c0_i32, %c0_i32_0 : i32, i32
  }
  func.func @transform_11(%arg0: i32) -> (i32, i32) {
    %c0_i32 = arith.constant 0 : i32
    %c0_i32_0 = arith.constant 0 : i32
    %c0_i32_1 = arith.constant 0 : i32
    return %c0_i32, %c0_i32_0 : i32, i32
  }
  func.func @transform_12(%arg0: i32) -> (i32, i32) {
    %c0_i32 = arith.constant 0 : i32
    %c0_i32_0 = arith.constant 0 : i32
    %c0_i32_1 = arith.constant 0 : i32
    return %c0_i32, %c0_i32_0 : i32, i32
  }
  func.func @transform_13(%arg0: i32) -> (i32, i32) {
    %c0_i32 = arith.constant 0 : i32
    %c0_i32_0 = arith.constant 0 : i32
    return %arg0, %c0_i32 : i32, i32
  }
}

</mosaic_0001>

<bundles_post_ra>
// kernel: tpu_custom_call.1
= control target key start
LH: loop header
LB: loop body
LE: loop exit
PB: predicated region body
PF: predicated region fallthrough
CT: control target
= control target key end

     0   :  { %18 = vsyncpa [#allocation3], 0  ;;  %s4809_s0 = inlined_call_operand.vmem [shape: f32[64,784], index: 0, kind: input, shape index: {}]   ;;  %s4810_s1 = inlined_call_operand.vmem [shape: bf16[784,256], index: 1, kind: input, shape index: {}]   ;;  %s4811_s2 = inlined_call_operand.vmem [shape: f32[1,256], index: 2, kind: input, shape index: {}]   ;;  %s4812_s3 = inlined_call_operand.vmem [shape: bf16[256,64], index: 3, kind: input, shape index: {}]   ;;  %s4813_s4 = inlined_call_operand.vmem [shape: f32[1,64], index: 4, kind: input, shape index: {}]   ;;  %s4814_s5 = inlined_call_operand.vmem [shape: bf16[64,32], index: 5, kind: input, shape index: {}]   ;;  %s4815_s6 = inlined_call_operand.vmem [shape: f32[1,32], index: 6, kind: input, shape index: {}]   ;;  %s4816_s7 = inlined_call_operand.vmem [shape: bf16[32,64], index: 7, kind: input, shape index: {}]   ;;  %s4817_s8 = inlined_call_operand.vmem [shape: f32[1,64], index: 8, kind: input, shape index: {}]   ;;  %s4818_s9 = inlined_call_operand.vmem [shape: bf16[64,256], index: 9, kind: input, shape index: {}]   ;;  %s4819_s10 = inlined_call_operand.vmem [shape: f32[1,256], index: 10, kind: input, shape index: {}]   ;;  %s4820_s11 = inlined_call_operand.vmem [shape: bf16[256,784], index: 11, kind: input, shape index: {}]   ;;  %s4821_s12 = inlined_call_operand.vmem [shape: f32[1,784], index: 12, kind: input, shape index: {}]   ;;  %s4822_s13 = inlined_call_operand.hbm [shape: bf16[64,784], index: 13, kind: output, shape index: {}]  }
   0x1   :  { %20 = vsyncpa [#allocation3 + $0x1], 0  ;;  %s3859_s25 = smov 0   ;;  %s3861_s26 = smov 0  }
   0x2   :  { %s3863_s27 = smov 0   ;;  %s3865_s28 = smov 0  }
   0x3 LB: > { %4826 = sst [smem:[#allocation5_spill]] %s3779_s27  ;;  %s3880_s29 = sadd.s32 4294967295, %s3783_s28   ;;  %s3783_s28 = sphi %s3865_s28, %s4831_s28   ;;  %s3779_s27 = sphi %s3863_s27, %s4833_s27   ;;  %s3775_s26 = sphi %s3861_s26, %s4835_s26   ;;  %s3771_s25 = sphi %s3859_s25, %s4834_s25  }
   0x4   : > { %s2957_s30 = sadd.s32 4294967294, %s3783_s28   ;;  %s3884_s14 = sadd.s32 1, %s3783_s28  }
   0x5   : > { %4827 = sst [smem:[#allocation6_spill]] %s3884_s14  ;;  %s311_s15 = sadd.s32 1, %s3779_s27 }
   0x6   : > { %s308_s16 = ssub.s32 %s3783_s28, %s3884_s14  ;;  %p321_p0 = scmp.ne.s32.totalorder %s3779_s27, %s3775_s26 }
   0x7   : > { %p309_p1 = scmp.eq.s32.totalorder %s308_s16, 0  ;;  %p322_p2 = scmp.eq.s32.totalorder %s3880_s29, 1 }
   0x8   : > { %p327_p3 = scmp.ne.s32.totalorder %s3775_s26, %s3771_s25  ;;  %p328_p4 = scmp.eq.s32.totalorder %s2957_s30, 1 }
   0x9   : > { %s3895_s17 = scalar_select %p309_p1, %s3779_s27, %s311_s15  }
   0xa   : > { %p3897_p5 = por %p322_p2, %p321_p0  ;;  %p3901_p6 = por %p328_p4, %p327_p3 }
   0xb   : > { %4828 = sst [smem:[#allocation7_spill]] %s3895_s17  ;;  %p2960_p7 = scmp.ge.s32.totalorder %s3783_s28, 1 }
   0xc   : > { %p392_p8 = scmp.lt.s32.totalorder %s3783_s28, 3 }
   0xe   : > { %p393_p9 = pnand %p2960_p7, %p392_p8 }
   0xf   : > { %s2961_s15 = sshll.u32 (!%p393_p9), %s3880_s29, 2  ;;  %s434_s20 = sand.u32 (!%p393_p9), 1, %s3775_s26  }
  0x10   : > { %396 = sbr.rel (%p393_p9) target bundleno = 1493 (0x5d5), region = 72  ;;  %p438_p10 = scmp.lt.s32.totalorder (!%p393_p9), %s2961_s15, 7 }
  0x11   : > { %s3337_s22 = smul.u32 (!%p393_p9), 112, %s434_s20  ;;  %s3786_s17 = smov (!%p393_p9), [#allocation2]  }
  0x12   : > { %s3339_s24 = smul.u32 (!%p393_p9), 1792, %s3880_s29  ;;  %s4769_s29 = scalar_lea.sflag (!%p393_p9), [#allocation3], %s434_s20 }
  0x13   : > { %s4730_s23 = scalar_lea.vmem (!%p393_p9), [#allocation2], %s3337_s22 }
  0x14   : > { %s2895_s30 = sshll.u32 (!%p393_p9), %s4730_s23, 4  ;;  %s4764_s30 = int_to_ptr.vmem [resolvable:$true] %s2895_s30 }
  0x15   : > { %v3382_v0 = vld [vmem:[%s4810_s1 + $0x74] ss:$8 sps:$4 sm:$0xff]   ;;  %v3384_v1 = vld [vmem:[%s4810_s1 + $0x70] ss:$8 sps:$4 sm:$0xff]   ;;  %v3388_v4 = vld [vmem:[%s4810_s1 + $0x64] ss:$8 sps:$4 sm:$0xff]  }
  0x16   : > { %1095 = vmatprep.subr.bf16.mxu0 %v3382_v0  ;;  %v3385_v2 = vld [vmem:[%s4810_s1 + $0x174] ss:$8 sps:$4 sm:$0xff]   ;;  %v3387_v3 = vld [vmem:[%s4810_s1 + $0x170] ss:$8 sps:$4 sm:$0xff]   ;;  %v3390_v5 = vld [vmem:[%s4810_s1 + $0x60] ss:$8 sps:$4 sm:$0xff]  }
  0x17   : > { %1096 = vmatpush1.bf16.msra.mxu0 %v3384_v1  ;;  %1148 = vmatprep.subr.bf16.mxu1 %v3385_v2  ;;  %v3391_v6 = vld [vmem:[%s4810_s1 + $0x164] ss:$8 sps:$4 sm:$0xff]   ;;  %v3393_v7 = vld [vmem:[%s4810_s1 + $0x160] ss:$8 sps:$4 sm:$0xff]   ;;  %v3394_v8 = vld [vmem:[%s4810_s1 + $0x54] ss:$8 sps:$4 sm:$0xff]  }
  0x18   : > { %1149 = vmatpush1.bf16.msra.mxu1 %v3387_v3  ;;  %1097 = vmatprep.subr.bf16.mxu0 %v3388_v4  ;;  %v3396_v9 = vld [vmem:[%s4810_s1 + $0x50] ss:$8 sps:$4 sm:$0xff]   ;;  %v3397_v10 = vld [vmem:[%s4810_s1 + $0x154] ss:$8 sps:$4 sm:$0xff]   ;;  %v3400_v11 = vld [vmem:[%s4810_s1 + $0x44] ss:$8 sps:$4 sm:$0xff]  }
  0x19   : > { %1150 = vmatprep.subr.bf16.mxu1 %v3391_v6  ;;  %v3399_v12 = vld [vmem:[%s4810_s1 + $0x150] ss:$8 sps:$4 sm:$0xff]   ;;  %v3403_v13 = vld [vmem:[%s4810_s1 + $0x144] ss:$8 sps:$4 sm:$0xff]   ;;  %v3402_v14 = vld [vmem:[%s4810_s1 + $0x40] ss:$8 sps:$4 sm:$0xff]  }
  0x1a   : > { %v3406_v15 = vld [vmem:[%s4810_s1 + $0x34] ss:$8 sps:$4 sm:$0xff]   ;;  %v3405_v16 = vld [vmem:[%s4810_s1 + $0x140] ss:$8 sps:$4 sm:$0xff]   ;;  %v3408_v18 = vld [vmem:[%s4810_s1 + $0x30] ss:$8 sps:$4 sm:$0xff]  }
  0x1b   : > { %1098 = vmatpush1.bf16.msra.mxu0 %v3390_v5  ;;  %v3409_v17 = vld [vmem:[%s4810_s1 + $0x134] ss:$8 sps:$4 sm:$0xff]   ;;  %v3412_v19 = vld [vmem:[%s4810_s1 + $0x24] ss:$8 sps:$4 sm:$0xff]   ;;  %v3411_v20 = vld [vmem:[%s4810_s1 + $0x130] ss:$8 sps:$4 sm:$0xff]  }
  0x1c   : > { %1099 = vmatprep.subr.bf16.mxu0 %v3394_v8  ;;  %1151 = vmatpush1.bf16.msra.mxu1 %v3393_v7  ;;  %v3415_v21 = vld [vmem:[%s4810_s1 + $0x124] ss:$8 sps:$4 sm:$0xff]   ;;  %v3414_v22 = vld [vmem:[%s4810_s1 + $0x20] ss:$8 sps:$4 sm:$0xff]   ;;  %v3418_v23 = vld [vmem:[%s4810_s1 + $0x14] ss:$8 sps:$4 sm:$0xff]  }
  0x1d   : > { %1152 = vmatprep.subr.bf16.mxu1 %v3397_v10  ;;  %v3417_v24 = vld [vmem:[%s4810_s1 + $0x120] ss:$8 sps:$4 sm:$0xff]   ;;  %v3421_v25 = vld [vmem:[%s4810_s1 + $0x114] ss:$8 sps:$4 sm:$0xff]   ;;  %v3420_v26 = vld [vmem:[%s4810_s1 + $0x10] ss:$8 sps:$4 sm:$0xff]  }
  0x1e   : > { %v3424_v27 = vld [vmem:[%s4810_s1 + $0x4] ss:$8 sps:$4 sm:$0xff]   ;;  %v3423_v28 = vld [vmem:[%s4810_s1 + $0x110] ss:$8 sps:$4 sm:$0xff]   ;;  %v3426_v30 = vld [vmem:[%s4810_s1] ss:$8 sps:$4 sm:$0xff]  }
  0x1f   : > { %1100 = vmatpush1.bf16.msra.mxu0 %v3396_v9  ;;  %v3427_v29 = vld [vmem:[%s4810_s1 + $0x104] ss:$8 sps:$4 sm:$0xff]   ;;  %v3430_v31 = vld [vmem:[%s4810_s1 + $0xf4] ss:$8 sps:$4 sm:$0xff]   ;;  %v3429_v32 = vld [vmem:[%s4810_s1 + $0x100] ss:$8 sps:$4 sm:$0xff]  }
  0x20   : > { %1101 = vmatprep.subr.bf16.mxu0 %v3400_v11  ;;  %1153 = vmatpush1.bf16.msra.mxu1 %v3399_v12  ;;  %v3433_v33 = vld [vmem:[%s4810_s1 + $0x1f4] ss:$8 sps:$4 sm:$0xff]   ;;  %v3432_v34 = vld [vmem:[%s4810_s1 + $0xf0] ss:$8 sps:$4 sm:$0xff]   ;;  %s4837_s15 = smov (!%p438_p10, %s2961_s15), 7  ;;  %vm1088_vm0 = vcmask 130048  }
  0x21   : > { %1154 = vmatprep.subr.bf16.mxu1 %v3403_v13  ;;  %v3436_v35 = vld [vmem:[%s4810_s1 + $0xe4] ss:$8 sps:$4 sm:$0xff]   ;;  %v3435_v36 = vld [vmem:[%s4810_s1 + $0x1f0] ss:$8 sps:$4 sm:$0xff]   ;;  %v3438_v38 = vld [vmem:[%s4810_s1 + $0xe0] ss:$8 sps:$4 sm:$0xff]  }
  0x22   : > { %v3439_v37 = vld [vmem:[%s4810_s1 + $0x1e4] ss:$8 sps:$4 sm:$0xff]   ;;  %s3338_s21 = smul.u32 56, %s4837_s15  ;;  %v3442_v39 = vld [vmem:[%s4810_s1 + $0xd4] ss:$8 sps:$4 sm:$0xff]   ;;  %vm1548_vm1 = vcmask 523264  }
  0x23   : > { %1102 = vmatpush1.bf16.msra.mxu0 %v3402_v14  ;;  %v3441_v40 = vld [vmem:[%s4810_s1 + $0x1e0] ss:$8 sps:$4 sm:$0xff]   ;;  %v3445_v41 = vld [vmem:[%s4810_s1 + $0x1d4] ss:$8 sps:$4 sm:$0xff]   ;;  %v3444_v42 = vld [vmem:[%s4810_s1 + $0xd0] ss:$8 sps:$4 sm:$0xff]  }
  0x24   : > { %1103 = vmatprep.subr.bf16.mxu0 %v3406_v15  ;;  %1155 = vmatpush1.bf16.msra.mxu1 %v3405_v16  ;;  %s4040_s14 = scalar_lea.vmem %s4809_s0, %s3338_s21  ;;  %v3448_v43 = vld [vmem:[%s4810_s1 + $0xc4] ss:$8 sps:$4 sm:$0xff]   ;;  %v3447_v44 = vld [vmem:[%s4810_s1 + $0x1d0] ss:$8 sps:$4 sm:$0xff]   ;;  %v3450_v48 = vld [vmem:[%s4810_s1 + $0xc0] ss:$8 sps:$4 sm:$0xff]   ;;  %s4762_s21 = scalar_lea.hbm %s4822_s13, %s3339_s24 }
  0x25   : > { %1156 = vmatprep.subr.bf16.mxu1 %v3409_v17  ;;  %v3451_v45 = vld [vmem:[%s4810_s1 + $0x1c4] ss:$8 sps:$4 sm:$0xff]   ;;  %v3454_v50 = vld [vmem:[%s4810_s1 + $0xb4] ss:$8 sps:$4 sm:$0xff]   ;;  %v3453_v51 = vld [vmem:[%s4810_s1 + $0x1c0] ss:$8 sps:$4 sm:$0xff]  }
  0x26   : > { %v447_v46 = vld [vmem:[%s4040_s14 + $0x8] sm:$0xff]  ;;  %v454_v47 = vld [vmem:[%s4040_s14 + $0x40] sm:$0xff]  ;;  %v449_v52 = vld [vmem:[%s4040_s14 + $0x18] sm:$0xff]  ;;  %vm1633_vm2 = vcmask 261120   ;;  %vm2866_vm3 = vcmask 125952   ;;  %s3727_s15 = sshll.u32 %s3786_s17, 4  ;;  %s3728_s15 = int_to_ptr.vmem [resolvable:$false] %s3727_s15 }
  0x27   : > { %1104 = vmatpush1.bf16.msra.mxu0 %v3408_v18  ;;  %v475_v49 = vpack.c.bf16 %v454_v47, %v447_v46  ;;  %v456_v53 = vld [vmem:[%s4040_s14 + $0x50] sm:$0xff]  ;;  %v3460_v57 = vld [vmem:[%s4810_s1 + $0xa4] ss:$8 sps:$4 sm:$0xff]   ;;  %v3462_v60 = vld [vmem:[%s4810_s1 + $0xa0] ss:$8 sps:$4 sm:$0xff]   ;;  %s3729_s22 = scalar_lea.vmem %s3728_s15, 3584  ;;  %p3730_p0 = scmp.lt.s32.totalorder %s4764_s30, %s3728_s15 }
  0x28   : > { %1105 = vmatprep.subr.bf16.mxu0 %v3412_v19  ;;  %1157 = vmatpush1.bf16.msra.mxu1 %v3411_v20  ;;  %v3457_v54 = vld [vmem:[%s4810_s1 + $0x1b4] ss:$8 sps:$4 sm:$0xff]   ;;  %v477_v55 = vpack.c.bf16 %v456_v53, %v449_v52  ;;  %v3456_v56 = vld [vmem:[%s4810_s1 + $0xb0] ss:$8 sps:$4 sm:$0xff]   ;;  %v3463_v59 = vld [vmem:[%s4810_s1 + $0x1a4] ss:$8 sps:$4 sm:$0xff]  }
  0x29   : > { %1158 = vmatprep.subr.bf16.mxu1 %v3415_v21  ;;  %1127 = vmatprep.mubr.bf16.mxu0 %v475_v49  ;;  %v3459_v58 = vld [vmem:[%s4810_s1 + $0x1b0] ss:$8 sps:$4 sm:$0xff]   ;;  %v3466_v61 = vld [vmem:[%s4810_s1 + $0x94] ss:$8 sps:$4 sm:$0xff]   ;;  %v3465_v62 = vld [vmem:[%s4810_s1 + $0x1a0] ss:$8 sps:$4 sm:$0xff]  }
  0x2a   : > { %1180 = vmatprep.mubr.bf16.mxu1 %v477_v55  ;;  %v3469_v63 = vld [vmem:[%s4810_s1 + $0x194] ss:$8 sps:$4 sm:$0xff]   ;;  %v3468_v0 = vld [vmem:[%s4810_s1 + $0x90] ss:$8 sps:$4 sm:$0xff]   ;;  %v3472_v2 = vld [vmem:[%s4810_s1 + $0x84] ss:$8 sps:$4 sm:$0xff]  }
  0x2b   : > { %1106 = vmatpush1.bf16.msra.mxu0 %v3414_v22  ;;  %v3471_v1 = vld [vmem:[%s4810_s1 + $0x190] ss:$8 sps:$4 sm:$0xff]   ;;  %v3474_v3 = vld [vmem:[%s4810_s1 + $0x80] ss:$8 sps:$4 sm:$0xff]   ;;  %v3475_v4 = vld [vmem:[%s4810_s1 + $0x184] ss:$8 sps:$4 sm:$0xff]  }
  0x2c   : > { %1107 = vmatprep.subr.bf16.mxu0 %v3418_v23  ;;  %1159 = vmatpush1.bf16.msra.mxu1 %v3417_v24  ;;  %v446_v5 = vld [vmem:[%s4040_s14] sm:$0xff]  ;;  %v453_v7 = vld [vmem:[%s4040_s14 + $0x38] sm:$0xff]  ;;  %v448_v9 = vld [vmem:[%s4040_s14 + $0x10] sm:$0xff] }
  0x2d   : > { %1160 = vmatprep.subr.bf16.mxu1 %v3421_v25  ;;  %v3477_v6 = vld [vmem:[%s4810_s1 + $0x180] ss:$8 sps:$4 sm:$0xff]   ;;  %v3480_v8 = vld [vmem:[%s4810_s1 + $0x274] ss:$8 sps:$4 sm:$0xff]   ;;  %v474_v11 = vpack.c.bf16 %v453_v7, %v446_v5  ;;  %v3478_v13 = vld [vmem:[%s4810_s1 + $0x270] ss:$8 sps:$4 sm:$0xff]  }
  0x2e   : > { %v455_v10 = vld [vmem:[%s4040_s14 + $0x48] sm:$0xff]  ;;  %v461_v12 = vld [vmem:[%s4040_s14 + $0x78] sm:$0xff]  ;;  %v468_v15 = vld [vmem:[%s4040_s14 + $0xb0] sm:$0xff] }
  0x2f   : > { %1108 = vmatpush1.bf16.msra.mxu0 %v3420_v26  ;;  %v3483_v14 = vld [vmem:[%s4810_s1 + $0x264] ss:$8 sps:$4 sm:$0xff]   ;;  %v476_v16 = vpack.c.bf16 %v455_v10, %v448_v9  ;;  %v482_v17 = vpack.c.bf16 %v468_v15, %v461_v12  ;;  %v3481_v21 = vld [vmem:[%s4810_s1 + $0x260] ss:$8 sps:$4 sm:$0xff]   ;;  %v3486_v22 = vld [vmem:[%s4810_s1 + $0x254] ss:$8 sps:$4 sm:$0xff]  }
  0x30   : > { %1109 = vmatprep.subr.bf16.mxu0 %v3424_v27  ;;  %1161 = vmatpush1.bf16.msra.mxu1 %v3423_v28  ;;  %v463_v18 = vld [vmem:[%s4040_s14 + $0x88] sm:$0xff]  ;;  %v470_v19 = vld [vmem:[%s4040_s14 + $0xc0] sm:$0xff]  ;;  %v460_v23 = vld [vmem:[%s4040_s14 + $0x70] sm:$0xff] }
  0x31   : > { %1162 = vmatprep.subr.bf16.mxu1 %v3427_v29  ;;  %v484_v20 = vpack.c.bf16 %v470_v19, %v463_v18  ;;  %v467_v24 = vld [vmem:[%s4040_s14 + $0xa8] sm:$0xff]  ;;  %v462_v25 = vld [vmem:[%s4040_s14 + $0x80] sm:$0xff]  ;;  %v469_v26 = vld [vmem:[%s4040_s14 + $0xb8] sm:$0xff] }
  0x32   : > { %v451_v27 = vld [vmem:[%s4040_s14 + $0x28] sm:$0xff]  ;;  %v458_v28 = vld [vmem:[%s4040_s14 + $0x60] sm:$0xff]  ;;  %v481_v29 = vpack.c.bf16 %v467_v24, %v460_v23  ;;  %v3510_v47 = vld [vmem:[%s4810_s1 + $0x2d4] ss:$8 sps:$4 sm:$0xff]  }
  0x33   : > { %1110 = vmatpush1.bf16.msra.mxu0 %v3426_v30  ;;  %v3484_v30 = vld [vmem:[%s4810_s1 + $0x250] ss:$8 sps:$4 sm:$0xff]   ;;  %v3505_v46 = vld [vmem:[%s4810_s1 + $0x2e0] ss:$8 sps:$4 sm:$0xff]   ;;  %v3513_v49 = vld [vmem:[%s4810_s1 + $0x2c4] ss:$8 sps:$4 sm:$0xff]  }
  0x34   : > { %1111 = vmatprep.subr.bf16.mxu0 %v3430_v31  ;;  %1163 = vmatpush1.bf16.msra.mxu1 %v3429_v32  ;;  %v479_v31 = vpack.c.bf16 %v458_v28, %v451_v27  ;;  %v3489_v32 = vld [vmem:[%s4810_s1 + $0x244] ss:$8 sps:$4 sm:$0xff]   ;;  %v3514_v52 = vld [vmem:[%s4810_s1 + $0x2b0] ss:$8 sps:$4 sm:$0xff]   ;;  %v3522_v55 = vld [vmem:[%s4810_s1 + $0x294] ss:$8 sps:$4 sm:$0xff]  }
  0x35   : > { %1164 = vmatprep.subr.bf16.mxu1 %v3433_v33  ;;  %v483_v33 = vpack.c.bf16 %v469_v26, %v462_v25  ;;  %v3519_v53 = vld [vmem:[%s4810_s1 + $0x2a4] ss:$8 sps:$4 sm:$0xff]   ;;  %v452_v7 = vld [vmem:[%s4040_s14 + $0x30] sm:$0xff]  ;;  %v3529_v12 = vld [vmem:[%s4812_s3 + $0x78] sm:$0xff]  }
  0x36   : > { %v466_v10 = vld [vmem:[%s4040_s14 + $0xa0] sm:$0xff]  ;;  %v3531_v15 = vld [vmem:[%s4812_s3 + $0x70] sm:$0xff]   ;;  %v3534_v18 = vld [vmem:[%s4812_s3 + $0x28] sm:$0xff]  }
  0x37   : > { %1112 = vmatpush2.bf16.msra.mxu0 %v3432_v34  ;;  %v3487_v34 = vld [vmem:[%s4810_s1 + $0x240] ss:$8 sps:$4 sm:$0xff]   ;;  %v3539_v23 = vld [vmem:[%s4812_s3 + $0x50] sm:$0xff]  }
  0x38   : > { %1113 = vmatprep.subr.bf16.mxu0 %v3436_v35  ;;  %1165 = vmatpush2.bf16.msra.mxu1 %v3435_v36  ;;  %v3492_v35 = vld [vmem:[%s4810_s1 + $0x234] ss:$8 sps:$4 sm:$0xff]   ;;  %v3490_v36 = vld [vmem:[%s4810_s1 + $0x230] ss:$8 sps:$4 sm:$0xff]   ;;  %v3535_v19 = vld [vmem:[%s4812_s3 + $0x60] sm:$0xff]  }
  0x39   : > { %1166 = vmatprep.subr.bf16.mxu1 %v3439_v37  ;;  %v3495_v37 = vld [vmem:[%s4810_s1 + $0x224] ss:$8 sps:$4 sm:$0xff]   ;;  %v3540_v24 = vld [vmem:[%s4812_s3 + $0x10] sm:$0xff]  }
  0x3a   : > { %v3541_v25 = vld [vmem:[%s4812_s3 + $0x48] sm:$0xff]   ;;  %v3543_v27 = vld [vmem:[%s4812_s3 + $0x40] sm:$0xff]  }
  0x3b   : > { %1114 = vmatpush2.bf16.msra.mxu0 %v3438_v38  ;;  %v3493_v38 = vld [vmem:[%s4810_s1 + $0x220] ss:$8 sps:$4 sm:$0xff]  }
  0x3c   : > { %1115 = vmatprep.subr.bf16.mxu0 %v3442_v39  ;;  %1167 = vmatpush2.bf16.msra.mxu1 %v3441_v40  ;;  %v3498_v39 = vld [vmem:[%s4810_s1 + $0x214] ss:$8 sps:$4 sm:$0xff]   ;;  %v3496_v40 = vld [vmem:[%s4810_s1 + $0x210] ss:$8 sps:$4 sm:$0xff]   ;;  %v3542_v26 = vld [vmem:[%s4812_s3 + $0x8] sm:$0xff]  }
  0x3d   : > { %1168 = vmatprep.subr.bf16.mxu1 %v3445_v41  ;;  %v3501_v41 = vld [vmem:[%s4810_s1 + $0x204] ss:$8 sps:$4 sm:$0xff]  }
  0x3e   : > { %v3544_v28 = vld [vmem:[%s4812_s3] sm:$0xff]  }
  0x3f   : > { %1116 = vmatpush2.bf16.msra.mxu0 %v3444_v42  ;;  %v3499_v42 = vld [vmem:[%s4810_s1 + $0x200] ss:$8 sps:$4 sm:$0xff]  }
  0x40   : > { %1117 = vmatprep.subr.bf16.mxu0 %v3448_v43  ;;  %1169 = vmatpush2.bf16.msra.mxu1 %v3447_v44  ;;  %v3504_v43 = vld [vmem:[%s4810_s1 + $0x2f4] ss:$8 sps:$4 sm:$0xff]   ;;  %v3502_v44 = vld [vmem:[%s4810_s1 + $0x2f0] ss:$8 sps:$4 sm:$0xff]  }
  0x41   : > { %1170 = vmatprep.subr.bf16.mxu1 %v3451_v45  ;;  %v3507_v45 = vld [vmem:[%s4810_s1 + $0x2e4] ss:$8 sps:$4 sm:$0xff]  }
  0x43   : > { %1118 = vmatpush2.bf16.msra.mxu0 %v3450_v48  ;;  %v3508_v48 = vld [vmem:[%s4810_s1 + $0x2d0] ss:$8 sps:$4 sm:$0xff]  }
  0x44   : > { %1119 = vmatprep.subr.bf16.mxu0 %v3454_v50  ;;  %1171 = vmatpush2.bf16.msra.mxu1 %v3453_v51  ;;  %v3511_v50 = vld [vmem:[%s4810_s1 + $0x2c0] ss:$8 sps:$4 sm:$0xff]   ;;  %v3516_v51 = vld [vmem:[%s4810_s1 + $0x2b4] ss:$8 sps:$4 sm:$0xff]  }
  0x45   : > { %1172 = vmatprep.subr.bf16.mxu1 %v3457_v54  ;;  %v3517_v54 = vld [vmem:[%s4810_s1 + $0x2a0] ss:$8 sps:$4 sm:$0xff]  }
  0x47   : > { %1120 = vmatpush2.bf16.msra.mxu0 %v3456_v56  ;;  %v3520_v56 = vld [vmem:[%s4810_s1 + $0x290] ss:$8 sps:$4 sm:$0xff]  }
  0x48   : > { %1121 = vmatprep.subr.bf16.mxu0 %v3460_v57  ;;  %1173 = vmatpush2.bf16.msra.mxu1 %v3459_v58  ;;  %v3525_v57 = vld [vmem:[%s4810_s1 + $0x284] ss:$8 sps:$4 sm:$0xff]   ;;  %v3523_v58 = vld [vmem:[%s4810_s1 + $0x280] ss:$8 sps:$4 sm:$0xff]  }
  0x49   : > { %1174 = vmatprep.subr.bf16.mxu1 %v3463_v59  ;;  %v450_v59 = vld [vmem:[%s4040_s14 + $0x20] sm:$0xff] }
  0x4b   : > { %1122 = vmatpush2.bf16.msra.mxu0 %v3462_v60  ;;  %v457_v60 = vld [vmem:[%s4040_s14 + $0x58] sm:$0xff] }
  0x4c   : > { %1123 = vmatprep.subr.bf16.mxu0 %v3466_v61  ;;  %1175 = vmatpush2.bf16.msra.mxu1 %v3465_v62  ;;  %v3528_v61 = vld [vmem:[%s4810_s1 + $0x304] ss:$8 sps:$4 sm:$0xff]   ;;  %v465_v62 = vld [vmem:[%s4040_s14 + $0x98] sm:$0xff] }
  0x4d   : > { %1176 = vmatprep.subr.bf16.mxu1 %v3469_v63  ;;  %v472_v63 = vld [vmem:[%s4040_s14 + $0xd0] sm:$0xff] }
  0x4f   : > { %1124 = vmatpush2.bf16.msra.mxu0 %v3468_v0  ;;  %v3526_v0 = vld [vmem:[%s4810_s1 + $0x300] ss:$8 sps:$4 sm:$0xff]  }
  0x50   : > { %1125 = vmatprep.subr.bf16.mxu0 %v3472_v2  ;;  %1177 = vmatpush2.bf16.msra.mxu1 %v3471_v1  ;;  %v478_v1 = vpack.c.bf16 %v457_v60, %v450_v59  ;;  %v486_v2 = vpack.c.bf16 %v472_v63, %v465_v62 }
  0x51   : > { %1178 = vmatprep.subr.bf16.mxu1 %v3475_v4  ;;  %v471_v4 = vld [vmem:[%s4040_s14 + $0xc8] sm:$0xff] }
  0x53   : > { %1126 = vmatpush2.bf16.msra.mxu0 %v3474_v3  ;;  %v464_v3 = vld [vmem:[%s4040_s14 + $0x90] sm:$0xff] }
  0x54   : > { %1201 = vmatprep.subr.bf16.mxu0 %v3480_v8  ;;  %1179 = vmatpush2.bf16.msra.mxu1 %v3477_v6  ;;  %v485_v5 = vpack.c.bf16 %v471_v4, %v464_v3  ;;  %v3785_v6 = vmov 0   ;;  %v459_v8 = vld [vmem:[%s4040_s14 + $0x68] sm:$0xff] }
  0x55   : > { %v480_v9 = vpack.c.bf16 %v459_v8, %v452_v7  ;;  %3251 = vmatprep.subr.bf16.mxu1 %v3529_v12 }
  0x56   : > { %1128 = vmatmul.mubr.bf16.vlgmr.msra.gmra.mxu0 %v474_v11  ;;  %v473_v11 = vld [vmem:[%s4040_s14 + $0xd8] sm:$0xff]  ;;  %s3723_s14 = scalar_lea.vmem %s4764_s30, 1792 }
  0x57   : > { %1202 = vmatpush1.bf16.msra.mxu0 %v3478_v13  ;;  %1137 = vmatprep.mubr.bf16.mxu0 %v482_v17  ;;  %v3530_v13 = vld [vmem:[%s4812_s3 + $0x38] sm:$0xff]   ;;  %v3533_v17 = vld [vmem:[%s4812_s3 + $0x68] sm:$0xff]   ;;  %p3724_p11 = scmp.ne.s32.totalorder %s4764_s30, %s3723_s14  ;;  %p3731_p1 = scmp.lt.s32.totalorder %s3729_s22, %s3723_s14 }
  0x58   : > { %1181 = vmatmul.mubr.bf16.vlgmr.msra.gmra.mxu1 %v476_v16  ;;  %1203 = vmatprep.subr.bf16.mxu0 %v3483_v14  ;;  %v487_v14 = vpack.c.bf16 %v473_v11, %v466_v10  ;;  %v3532_v16 = vld [vmem:[%s4812_s3 + $0x30] sm:$0xff]  }
  0x59   : > { %1190 = vmatprep.mubr.bf16.mxu1 %v484_v20  ;;  %3252 = vmatpush3.bf16.msra.mxu1 %v3530_v13  ;;  %v3536_v20 = vld [vmem:[%s4812_s3 + $0x20] sm:$0xff]   ;;  %p3725_p12 = pnand %p3724_p11, %p3897_p5  ;;  %p3732_p2 = por %p3731_p1, %p3730_p0 }
  0x5a   : > { %3253 = vmatprep.subr.bf16.mxu1 %v3531_v15 }
  0x5b   : > { %1204 = vmatpush1.bf16.msra.mxu0 %v3481_v21  ;;  %v3537_v21 = vld [vmem:[%s4812_s3 + $0x58] sm:$0xff]   ;;  %p3726_p13 = pneg %p3725_p12 }
  0x5c   : > { %1205 = vmatprep.subr.bf16.mxu0 %v3486_v22  ;;  %v3538_v22 = vld [vmem:[%s4812_s3 + $0x18] sm:$0xff]  }
  0x5d   : > { %3254 = vmatpush3.bf16.msra.mxu1 %v3532_v16  ;;  %p3733_p3 = pnand %p3732_p2, %p3726_p13 }
  0x5e   : > { %1138 = vmatmul.mubr.bf16.gmra.mxu0 %v481_v29  ;;  %3255 = vmatprep.subr.bf16.mxu1 %v3533_v17 }
  0x5f   : > { %1206 = vmatpush1.bf16.msra.mxu0 %v3484_v30  ;;  %1233 = vmatprep.mubr.bf16.mxu0 %v479_v31 }
  0x60   : > { %1207 = vmatprep.subr.bf16.mxu0 %v3489_v32  ;;  %1191 = vmatmul.mubr.bf16.gmra.mxu1 %v483_v33 }
  0x61   : > { %3256 = vmatpush3.bf16.msra.mxu1 %v3534_v18 }
  0x62   : > { %3257 = vmatprep.subr.bf16.mxu1 %v3535_v19 }
  0x63   : > { %1208 = vmatpush1.bf16.msra.mxu0 %v3487_v34 }
  0x64   : > { %1209 = vmatprep.subr.bf16.mxu0 %v3492_v35 }
  0x65   : > { %3258 = vmatpush3.bf16.msra.mxu1 %v3536_v20 }
  0x66   : > { %3259 = vmatprep.subr.bf16.mxu1 %v3537_v21 }
  0x67   : > { %1210 = vmatpush1.bf16.msra.mxu0 %v3490_v36  ;;  %v588_v36 = vlaneseq }
  0x68   : > { %1211 = vmatprep.subr.bf16.mxu0 %v3495_v37 }
  0x69   : > { %3260 = vmatpush3.bf16.msra.mxu1 %v3538_v22 }
  0x6a   : > { %3261 = vmatprep.subr.bf16.mxu1 %v3539_v23 }
  0x6b   : > { %1212 = vmatpush1.bf16.msra.mxu0 %v3493_v38 }
  0x6c   : > { %1213 = vmatprep.subr.bf16.mxu0 %v3498_v39 }
  0x6d   : > { %3262 = vmatpush3.bf16.msra.mxu1 %v3540_v24 }
  0x6e   : > { %3263 = vmatprep.subr.bf16.mxu1 %v3541_v25 }
  0x6f   : > { %1214 = vmatpush1.bf16.msra.mxu0 %v3496_v40  ;;  %v4286_v40 = vshrl.u32 %v588_v36, 7 }
  0x70   : > { %1215 = vmatprep.subr.bf16.mxu0 %v3501_v41 }
  0x71   : > { %3264 = vmatpush3.bf16.msra.mxu1 %v3542_v26 }
  0x72   : > { %3265 = vmatprep.subr.bf16.mxu1 %v3543_v27 }
  0x73   : > { %1216 = vmatpush1.bf16.msra.mxu0 %v3499_v42 }
  0x74   : > { %1217 = vmatprep.subr.bf16.mxu0 %v3504_v43 }
  0x75   : > { %3266 = vmatpush3.bf16.msra.mxu1 %v3544_v28 }
  0x77   : > { %1218 = vmatpush2.bf16.msra.mxu0 %v3502_v44  ;;  %v4289_v44 = vsub.s32 1, %v4286_v40 }
  0x78   : > { %1219 = vmatprep.subr.bf16.mxu0 %v3507_v45  ;;  %v586_v45 = vld [vmem:[%s4811_s2] sm:$0x3] }
  0x7b   : > { %1220 = vmatpush2.bf16.msra.mxu0 %v3505_v46  ;;  %v4295_v46 = vsub.s32 0, %v4286_v40 }
  0x7c   : > { %1221 = vmatprep.subr.bf16.mxu0 %v3510_v47 }
  0x7f   : > { %1222 = vmatpush2.bf16.msra.mxu0 %v3508_v48 }
  0x80   : > { %1223 = vmatprep.subr.bf16.mxu0 %v3513_v49 }
  0x83   : > { %1224 = vmatpush2.bf16.msra.mxu0 %v3511_v50  ;;  %v595_v50 = vrot.slane %v586_v45, %v4289_v44 }
  0x84   : > { %1225 = vmatprep.subr.bf16.mxu0 %v3516_v51  ;;  %v591_v51 = vrot.slane %v586_v45, %v4295_v46 }
  0x87   : > { %1226 = vmatpush2.bf16.msra.mxu0 %v3514_v52 }
  0x88   : > { %1227 = vmatprep.subr.bf16.mxu0 %v3519_v53 }
  0x8b   : > { %1228 = vmatpush2.bf16.msra.mxu0 %v3517_v54 }
  0x8c   : > { %1229 = vmatprep.subr.bf16.mxu0 %v3522_v55 }
  0x8f   : > { %1230 = vmatpush2.bf16.msra.mxu0 %v3520_v56 }
  0x90   : > { %1231 = vmatprep.subr.bf16.mxu0 %v3525_v57 }
  0x93   : > { %1232 = vmatpush2.bf16.msra.mxu0 %v3523_v58 }
  0x94   : > { %1268 = vmatprep.subr.bf16.mxu0 %v3528_v61 }
  0x96   : > { %1234 = vmatmul.mubr.bf16.vlgmr.msra.gmra.mxu0 %v478_v1 }
  0x97   : > { %1269 = vmatpush1.bf16.msra.mxu0 %v3526_v0  ;;  %1243 = vmatprep.mubr.bf16.mxu0 %v486_v2 }
  0x9e   : > { %1244 = vmatmul.mubr.bf16.gmra.mxu0 %v485_v5 }
  0x9f   : > { %1286 = vmatprep.mubr.bf16.mxu0 %v3785_v6 }
  0xa6   : > { %3061 = vmatmul.mubr.msk.bf16.vlgmr.msra.gmra.mxu0 %vm1088_vm0, %v480_v9 }
  0xa7   : > { %1296 = vmatprep.mubr.bf16.mxu0 %v3785_v6 }
  0xae   : > { %3062 = vmatmul.mubr.msk.bf16.gmra.mxu0 %vm1088_vm0, %v487_v14 }
  0xaf   : > { %1793 = vmatprep.mubr.bf16.mxu0 %v3785_v6 }
 0x116   : > { %v1129_v29 = vpop.f32.mrf.mxu0 }
 0x117   : > { %v1130_v58 = vadd.f32 %v1129_v29, %v591_v51 }
 0x118   : > { %v1131_v30 = vpop.f32.mrf.mxu0  ;;  %v1182_v37 = vpop.f32.mrf.mxu1 }
 0x119   : > { %v1132_v56 = vadd.f32 %v1131_v30, %v595_v50  ;;  %v1183_v1 = vadd.f32 %v1182_v37, %v1130_v58 }
 0x11a   : > { %v1133_v31 = vpop.f32.mrf.mxu0  ;;  %v1184_v41 = vpop.f32.mrf.mxu1 }
 0x11b   : > { %v1134_v57 = vadd.f32 %v1133_v31, %v591_v51  ;;  %v1185_v63 = vadd.f32 %v1184_v41, %v1132_v56 }
 0x11c   : > { %v1135_v32 = vpop.f32.mrf.mxu0  ;;  %v1186_v47 = vpop.f32.mrf.mxu1 }
 0x11d   : > { %v1136_v60 = vadd.f32 %v1135_v32, %v595_v50  ;;  %v1187_v0 = vadd.f32 %v1186_v47, %v1134_v57 }
 0x11e   : > { %v1139_v33 = vpop.f32.mrf.mxu0  ;;  %v1188_v52 = vpop.f32.mrf.mxu1 }
 0x11f   : > { %v1189_v3 = vadd.f32 %v1188_v52, %v1136_v60  ;;  %v1140_v15 = vadd.f32 %v1139_v33, %v591_v51 }
 0x120   : > { %v1141_v34 = vpop.f32.mrf.mxu0  ;;  %v1192_v54 = vpop.f32.mrf.mxu1 }
 0x121   : > { %v1142_v7 = vadd.f32 %v1141_v34, %v595_v50  ;;  %v1193_v27 = vadd.f32 %v1192_v54, %v1140_v15  ;;  %v3547_v54 = vld [vmem:[%s4814_s5 + $0x8] sm:$0xff]  }
 0x122   : > { %v1143_v35 = vpop.f32.mrf.mxu0  ;;  %v1194_v61 = vpop.f32.mrf.mxu1 }
 0x123   : > { %v1144_v11 = vadd.f32 %v1143_v35, %v591_v51  ;;  %v1195_v23 = vadd.f32 %v1194_v61, %v1142_v7 }
 0x124   : > { %v1145_v38 = vpop.f32.mrf.mxu0  ;;  %v1196_v8 = vpop.f32.mrf.mxu1 }
 0x125   : > { %v1146_v18 = vadd.f32 %v1145_v38, %v595_v50  ;;  %v1197_v24 = vadd.f32 %v1196_v8, %v1144_v11 }
 0x126   : > { %v1198_v20 = vpop.f32.mrf.mxu1 }
 0x127   : > { %v1199_v30 = vadd.f32 %v1198_v20, %v1146_v18  ;;  %v3551_v18 = vld [vmem:[%s4818_s9 + $0x30] ss:$8 sps:$4 sm:$0xff]  }
 0x156   : > { %v1235_v39 = vpop.f32.mrf.mxu0 }
 0x157   : > { %v1236_v9 = vadd.f32 %v1235_v39, %v1183_v1 }
 0x158   : > { %v1237_v42 = vpop.f32.mrf.mxu0 }
 0x159   : > { %v1238_v4 = vadd.f32 %v1237_v42, %v1185_v63 }
 0x15a   : > { %v1239_v43 = vpop.f32.mrf.mxu0 }
 0x15b   : > { %v1240_v5 = vadd.f32 %v1239_v43, %v1187_v0 }
 0x15c   : > { %v1241_v48 = vpop.f32.mrf.mxu0 }
 0x15d   : > { %v1242_v12 = vadd.f32 %v1241_v48, %v1189_v3 }
 0x15e   : > { %v1245_v49 = vpop.f32.mrf.mxu0 }
 0x15f   : > { %v1246_v35 = vadd.f32 %v1245_v49, %v1193_v27  ;;  %v3545_v49 = vld [vmem:[%s4814_s5 + $0x18] sm:$0xff]  }
 0x160   : > { %v1247_v53 = vpop.f32.mrf.mxu0  ;;  %3317 = vmatprep.subr.bf16.mxu1 %v3545_v49 }
 0x161   : > { %v1248_v31 = vadd.f32 %v1247_v53, %v1195_v23  ;;  %v3546_v53 = vld [vmem:[%s4814_s5 + $0x10] sm:$0xff]  }
 0x162   : > { %v1249_v55 = vpop.f32.mrf.mxu0 }
 0x163   : > { %v1250_v32 = vadd.f32 %v1249_v55, %v1197_v24  ;;  %v3548_v55 = vld [vmem:[%s4814_s5] sm:$0xff]  }
 0x164   : > { %v1251_v59 = vpop.f32.mrf.mxu0 }
 0x165   : > { %v1252_v37 = vadd.f32 %v1251_v59, %v1199_v30  ;;  %v3063_v59 = vld [vmem:[%s4813_s4] ss:$0 sm:$0xff] }
 0x166   : > { %v1288_v62 = vpop.f32.mrf.mxu0 }
 0x167   : > { %v1289_v16 = vadd.f32 %v1288_v62, %v1236_v9 }
 0x168   : > { %v1290_v2 = vpop.f32.mrf.mxu0 }
 0x169   : > { %v1291_v13 = vadd.f32 %v1290_v2, %v1238_v4  ;;  %v1307_v28 = vmax.f32 %v1289_v16, 0.0  ;;  %v3549_v16 = vld [vmem:[%s4816_s7 + $0x8] sm:$0xff]  }
 0x16a   : > { %v1292_v10 = vpop.f32.mrf.mxu0 }
 0x16b   : > { %v1293_v14 = vadd.f32 %v1292_v10, %v1240_v5  ;;  %v1308_v25 = vmax.f32 %v1291_v13, 0.0 }
 0x16c   : > { %v1294_v17 = vpop.f32.mrf.mxu0 }
 0x16d   : > { %v1295_v19 = vadd.f32 %v1294_v17, %v1242_v12  ;;  %v1309_v21 = vmax.f32 %v1293_v14, 0.0  ;;  %v3550_v17 = vld [vmem:[%s4816_s7] sm:$0xff]  }
 0x16e   : > { %v1298_v22 = vpop.f32.mrf.mxu0 }
 0x16f   : > { %v1310_v26 = vmax.f32 %v1295_v19, 0.0  ;;  %v1315_v33 = vpack.c.bf16 %v1309_v21, %v1307_v28  ;;  %v1299_v41 = vadd.f32 %v1298_v22, %v1246_v35  ;;  %v3553_v19 = vld [vmem:[%s4818_s9 + $0x34] ss:$8 sps:$4 sm:$0xff]   ;;  %v3080_v22 = vld [vmem:[%s4815_s6] ss:$0 sm:$0xff] }
 0x170   : > { %v1300_v29 = vpop.f32.mrf.mxu0  ;;  %1769 = vmatprep.subr.bf16.mxu0 %v3553_v19 }
 0x171   : > { %v1316_v34 = vpack.c.bf16 %v1310_v26, %v1308_v25  ;;  %v1301_v38 = vadd.f32 %v1300_v29, %v1248_v31  ;;  %v1311_v50 = vmax.f32 %v1299_v41, 0.0  ;;  %1770 = vmatpush1.bf16.msra.mxu0 %v3551_v18  ;;  %v3560_v41 = vld [vmem:[%s4818_s9] ss:$8 sps:$4 sm:$0xff]  }
 0x172   : > { %v1302_v36 = vpop.f32.mrf.mxu0 }
 0x173   : > { %v1303_v39 = vadd.f32 %v1302_v36, %v1250_v32  ;;  %1486 = vmatprep.mubr.bf16.mxu1 %v1316_v34  ;;  %v1312_v47 = vmax.f32 %v1301_v38, 0.0  ;;  %v3554_v36 = vld [vmem:[%s4818_s9 + $0x20] ss:$8 sps:$4 sm:$0xff]   ;;  %v3557_v38 = vld [vmem:[%s4818_s9 + $0x10] ss:$8 sps:$4 sm:$0xff]  }
 0x174   : > { %v1304_v42 = vpop.f32.mrf.mxu0  ;;  %1487 = vmatmul.mubr.bf16.vlgmr.msra.gmra.mxu1 %v1315_v33  ;;  %v3556_v33 = vld [vmem:[%s4818_s9 + $0x24] ss:$8 sps:$4 sm:$0xff]  }
 0x175   : > { %v1305_v43 = vadd.f32 %v1304_v42, %v1252_v37  ;;  %v1313_v45 = vmax.f32 %v1303_v39, 0.0  ;;  %3318 = vmatpush3.bf16.msra.mxu1 %v3545_v49  ;;  %1771 = vmatprep.subr.bf16.mxu0 %v3556_v33  ;;  %v3559_v37 = vld [vmem:[%s4818_s9 + $0x14] ss:$8 sps:$4 sm:$0xff]   ;;  %v3562_v39 = vld [vmem:[%s4818_s9 + $0x4] ss:$8 sps:$4 sm:$0xff]  }
 0x176   : > { %3319 = vmatprep.subr.bf16.mxu1 %v3546_v53  ;;  %1772 = vmatpush1.bf16.msra.mxu0 %v3554_v36  ;;  %v3563_v42 = vld [vmem:[%s4820_s11 + $0x188] ss:$28 sps:$4 sm:$0xff]   ;;  %v3581_v49 = vld [vmem:[%s4820_s11 + $0xe0] ss:$28 sps:$4 sm:$0xff]  }
 0x177   : > { %v1314_v48 = vmax.f32 %v1305_v43, 0.0  ;;  %v1317_v52 = vpack.c.bf16 %v1313_v45, %v1311_v50  ;;  %1773 = vmatprep.subr.bf16.mxu0 %v3559_v37  ;;  %v3565_v43 = vld [vmem:[%s4820_s11 + $0x18c] ss:$28 sps:$4 sm:$0xff]   ;;  %v3568_v45 = vld [vmem:[%s4820_s11 + $0x194] ss:$28 sps:$4 sm:$0xff]  }
 0x178   : > { %v3577_v50 = vld [vmem:[%s4820_s11 + $0x11c] ss:$28 sps:$4 sm:$0xff]   ;;  %v3610_v33 = vld [vmem:[%s4820_s11 + $0xc] ss:$28 sps:$4 sm:$0xff]   ;;  %v3616_v37 = vld [vmem:[%s4820_s11 + $0x354] ss:$28 sps:$4 sm:$0xff]  }
 0x179   : > { %v1318_v51 = vpack.c.bf16 %v1314_v48, %v1312_v47  ;;  %3320 = vmatpush3.bf16.msra.mxu1 %v3546_v53  ;;  %v3571_v47 = vld [vmem:[%s4820_s11 + $0x154] ss:$28 sps:$4 sm:$0xff]   ;;  %v3589_v53 = vld [vmem:[%s4820_s11 + $0xac] ss:$28 sps:$4 sm:$0xff]  }
 0x17a   : > { %3321 = vmatprep.subr.bf16.mxu1 %v3547_v54  ;;  %1774 = vmatpush1.bf16.msra.mxu0 %v3557_v38  ;;  %v3569_v48 = vld [vmem:[%s4820_s11 + $0x150] ss:$28 sps:$4 sm:$0xff]   ;;  %v3608_v36 = vld [vmem:[%s4820_s11 + $0x8] ss:$28 sps:$4 sm:$0xff]  }
 0x17b   : > { %1494 = vmatprep.mubr.bf16.mxu1 %v1318_v51  ;;  %1775 = vmatprep.subr.bf16.mxu0 %v3562_v39  ;;  %v3575_v51 = vld [vmem:[%s4820_s11 + $0x118] ss:$28 sps:$4 sm:$0xff]   ;;  %v3614_v38 = vld [vmem:[%s4820_s11 + $0x350] ss:$28 sps:$4 sm:$0xff]  }
 0x17c   : > { %1495 = vmatmul.mubr.bf16.gmra.mxu1 %v1317_v52  ;;  %v3583_v52 = vld [vmem:[%s4820_s11 + $0xe4] ss:$28 sps:$4 sm:$0xff]   ;;  %v3622_v39 = vld [vmem:[%s4820_s11 + $0x31c] ss:$28 sps:$4 sm:$0xff]  }
 0x17d   : > { %3322 = vmatpush3.bf16.msra.mxu1 %v3547_v54  ;;  %v3587_v54 = vld [vmem:[%s4820_s11 + $0xa8] ss:$28 sps:$4 sm:$0xff]  }
 0x17e   : > { %3323 = vmatprep.subr.bf16.mxu1 %v3548_v55  ;;  %1776 = vmatpush1.bf16.msra.mxu0 %v3560_v41  ;;  %v3620_v41 = vld [vmem:[%s4820_s11 + $0x318] ss:$28 sps:$4 sm:$0xff]  }
 0x17f   : > { %2620 = vmatprep.subr.bf16.mxu0 %v3568_v45  ;;  %v3634_v45 = vld [vmem:[%s4820_s11 + $0x2ac] ss:$28 sps:$4 sm:$0xff]  }
 0x181   : > { %3324 = vmatpush3.bf16.msra.mxu1 %v3548_v55  ;;  %v3595_v55 = vld [vmem:[%s4820_s11 + $0x74] ss:$28 sps:$4 sm:$0xff]  }
 0x182   : > { %3329 = vmatprep.subr.bf16.mxu1 %v3549_v16 }
 0x234   : > { %v3267_v56 = vpop.f32.mrf.mxu1 }
 0x236   : > { %v3268_v57 = vpop.f32.mrf.mxu1 }
 0x237   : > { %v3269_v58 = vadd.f32 %v3268_v57, %v3267_v56  ;;  %v3593_v56 = vld [vmem:[%s4820_s11 + $0x70] ss:$28 sps:$4 sm:$0xff]   ;;  %v3601_v57 = vld [vmem:[%s4820_s11 + $0x3c] ss:$28 sps:$4 sm:$0xff]  }
 0x238   : > { %v3270_v60 = vpop.f32.mrf.mxu1 }
 0x239   : > { %v1489_v62 = vadd.f32 %v3269_v58, %v3063_v59  ;;  %v3599_v58 = vld [vmem:[%s4820_s11 + $0x38] ss:$28 sps:$4 sm:$0xff]  }
 0x23a   : > { %v3271_v61 = vpop.f32.mrf.mxu1 }
 0x23b   : > { %v3272_v63 = vadd.f32 %v3271_v61, %v3270_v60  ;;  %v1503_v3 = vmax.f32 %v1489_v62, 0.0  ;;  %v3605_v60 = vld [vmem:[%s4820_s11] ss:$28 sps:$4 sm:$0xff]   ;;  %v3613_v61 = vld [vmem:[%s4820_s11 + $0x34c] ss:$28 sps:$4 sm:$0xff]  }
 0x23c   : > { %v3273_v0 = vpop.f32.mrf.mxu1  ;;  %v3611_v62 = vld [vmem:[%s4820_s11 + $0x348] ss:$28 sps:$4 sm:$0xff]  }
 0x23d   : > { %v1492_v1 = vadd.f32 %v3272_v63, %v3063_v59  ;;  %v3619_v63 = vld [vmem:[%s4820_s11 + $0x314] ss:$28 sps:$4 sm:$0xff]  }
 0x23e   : > { %v3274_v2 = vpop.f32.mrf.mxu1 }
 0x23f   : > { %v1504_v4 = vmax.f32 %v1492_v1, 0.0  ;;  %v3275_v5 = vadd.f32 %v3274_v2, %v3273_v0  ;;  %v3617_v0 = vld [vmem:[%s4820_s11 + $0x310] ss:$28 sps:$4 sm:$0xff]   ;;  %v3625_v1 = vld [vmem:[%s4820_s11 + $0x2dc] ss:$28 sps:$4 sm:$0xff]  }
 0x240   : > { %v3276_v7 = vpop.f32.mrf.mxu1  ;;  %v3623_v2 = vld [vmem:[%s4820_s11 + $0x2d8] ss:$28 sps:$4 sm:$0xff]  }
 0x241   : > { %v1507_v8 = vpack.c.bf16 %v1504_v4, %v1503_v3  ;;  %v1497_v10 = vadd.f32 %v3275_v5, %v3063_v59  ;;  %v3631_v3 = vld [vmem:[%s4820_s11 + $0x2a4] ss:$28 sps:$4 sm:$0xff]   ;;  %v3637_v5 = vld [vmem:[%s4820_s11 + $0x26c] ss:$28 sps:$4 sm:$0xff]  }
 0x242   : > { %v3277_v9 = vpop.f32.mrf.mxu1  ;;  %v3629_v4 = vld [vmem:[%s4820_s11 + $0x2a0] ss:$28 sps:$4 sm:$0xff]  }
 0x243   : > { %v3278_v11 = vadd.f32 %v3277_v9, %v3276_v7  ;;  %3325 = vmatprep.mubr.msk.bf16.mxu1 %vm1548_vm1, %v1507_v8  ;;  %v1505_v13 = vmax.f32 %v1497_v10, 0.0  ;;  %v3635_v7 = vld [vmem:[%s4820_s11 + $0x268] ss:$28 sps:$4 sm:$0xff]   ;;  %v3087_v10 = vld [vmem:[%s4817_s8] ss:$0 sm:$0xff] }
 0x245   : > { %v1500_v12 = vadd.f32 %v3278_v11, %v3063_v59  ;;  %v3607_v59 = vld [vmem:[%s4820_s11 + $0x4] ss:$28 sps:$4 sm:$0xff]  }
 0x247   : > { %v1506_v14 = vmax.f32 %v1500_v12, 0.0 }
 0x249   : > { %v1508_v15 = vpack.c.bf16 %v1506_v14, %v1505_v13 }
 0x24b   : > { %3326 = vmatmul.mubr.msk.bf16.vlgmr.msra.gmra.mxu1 %vm1548_vm1, %v1508_v15 }
 0x24c   : > { %3330 = vmatpush3.bf16.msra.mxu1 %v3549_v16 }
 0x24d   : > { %3331 = vmatprep.subr.bf16.mxu1 %v3550_v17 }
 0x250   : > { %3332 = vmatpush3.bf16.msra.mxu1 %v3550_v17  ;;  %v3566_v17 = vld [vmem:[%s4820_s11 + $0x190] ss:$28 sps:$4 sm:$0xff]  }
 0x251   : > { %2567 = vmatprep.subr.bf16.mxu1 %v3565_v43  ;;  %v3626_v43 = vld [vmem:[%s4820_s11 + $0x2e0] ss:$28 sps:$4 sm:$0xff]  }
 0x30b   : > { %v3327_v20 = vpop.f32.mrf.mxu1 }
 0x30c   : > { %v1598_v26 = vadd.f32 %v3327_v20, %v3080_v22  ;;  %v3574_v20 = vld [vmem:[%s4820_s11 + $0x15c] ss:$28 sps:$4 sm:$0xff]  }
 0x30d   : > { %v1589_v21 = vpop.f32.mrf.mxu1 }
 0x30e   : > { %v1590_v24 = vadd.f32 %v3080_v22, %v1589_v21  ;;  %v1606_v32 = vmax.f32 %v1598_v26, 0.0  ;;  %v3578_v26 = vld [vmem:[%s4820_s11 + $0x120] ss:$28 sps:$4 sm:$0xff]  }
 0x30f   : > { %v3328_v23 = vpop.f32.mrf.mxu1 }
 0x310   : > { %v1601_v25 = vadd.f32 %v3328_v23, %v3080_v22  ;;  %v1604_v30 = vmax.f32 %v1590_v24, 0.0  ;;  %v3580_v24 = vld [vmem:[%s4820_s11 + $0x124] ss:$28 sps:$4 sm:$0xff]  }
 0x311   : > { %v1592_v27 = vpop.f32.mrf.mxu1 }
 0x312   : > { %v1593_v28 = vadd.f32 %v3080_v22, %v1592_v27  ;;  %v1607_v29 = vmax.f32 %v1601_v25, 0.0  ;;  %v3572_v22 = vld [vmem:[%s4820_s11 + $0x158] ss:$28 sps:$4 sm:$0xff]  }
 0x314   : > { %v1605_v31 = vmax.f32 %v1593_v28, 0.0  ;;  %v1609_v35 = vpack.c.bf16 %v1607_v29, %v1606_v32  ;;  %v3584_v28 = vld [vmem:[%s4820_s11 + $0xe8] ss:$28 sps:$4 sm:$0xff]   ;;  %v3592_v29 = vld [vmem:[%s4820_s11 + $0xb4] ss:$28 sps:$4 sm:$0xff]  }
 0x315   : > { %v3596_v32 = vld [vmem:[%s4820_s11 + $0x78] ss:$28 sps:$4 sm:$0xff]  }
 0x316   : > { %v1608_v34 = vpack.c.bf16 %v1605_v31, %v1604_v30  ;;  %v3590_v30 = vld [vmem:[%s4820_s11 + $0xb0] ss:$28 sps:$4 sm:$0xff]   ;;  %v3598_v31 = vld [vmem:[%s4820_s11 + $0x7c] ss:$28 sps:$4 sm:$0xff]  }
 0x318   : > { %3333 = vmatprep.mubr.msk.bf16.mxu1 %vm1633_vm2, %v1608_v34  ;;  %v3604_v34 = vld [vmem:[%s4820_s11 + $0x44] ss:$28 sps:$4 sm:$0xff]  }
 0x319   : > { %3334 = vmatmul.mubr.msk.bf16.vlgmr.msra.gmra.mxu1 %vm1633_vm2, %v1609_v35  ;;  %v3602_v35 = vld [vmem:[%s4820_s11 + $0x40] ss:$28 sps:$4 sm:$0xff]  }
 0x31a   : > { %2568 = vmatpush1.bf16.msra.mxu1 %v3563_v42  ;;  %v3628_v42 = vld [vmem:[%s4820_s11 + $0x2e4] ss:$28 sps:$4 sm:$0xff]  }
 0x31b   : > { %2569 = vmatprep.subr.bf16.mxu1 %v3571_v47  ;;  %v3632_v47 = vld [vmem:[%s4820_s11 + $0x2a8] ss:$28 sps:$4 sm:$0xff]  }
 0x31e   : > { %2570 = vmatpush1.bf16.msra.mxu1 %v3569_v48  ;;  %v3640_v48 = vld [vmem:[%s4820_s11 + $0x274] ss:$28 sps:$4 sm:$0xff]  }
 0x31f   : > { %2571 = vmatprep.subr.bf16.mxu1 %v3577_v50  ;;  %v3638_v50 = vld [vmem:[%s4820_s11 + $0x270] ss:$28 sps:$4 sm:$0xff]  }
 0x322   : > { %2572 = vmatpush1.bf16.msra.mxu1 %v3575_v51  ;;  %v3643_v51 = vld [vmem:[%s4820_s11 + $0x234] ss:$28 sps:$4 sm:$0xff]  }
 0x323   : > { %2573 = vmatprep.subr.bf16.mxu1 %v3583_v52  ;;  %v3646_v52 = vld [vmem:[%s4820_s11 + $0x23c] ss:$28 sps:$4 sm:$0xff]  }
 0x326   : > { %2574 = vmatpush1.bf16.msra.mxu1 %v3581_v49  ;;  %v3641_v49 = vld [vmem:[%s4820_s11 + $0x230] ss:$28 sps:$4 sm:$0xff]  }
 0x327   : > { %2575 = vmatprep.subr.bf16.mxu1 %v3589_v53  ;;  %v3644_v53 = vld [vmem:[%s4820_s11 + $0x238] ss:$28 sps:$4 sm:$0xff]  }
 0x32a   : > { %2576 = vmatpush1.bf16.msra.mxu1 %v3587_v54  ;;  %v3649_v54 = vld [vmem:[%s4820_s11 + $0x1fc] ss:$28 sps:$4 sm:$0xff]  }
 0x32b   : > { %2577 = vmatprep.subr.bf16.mxu1 %v3595_v55  ;;  %v3652_v55 = vld [vmem:[%s4820_s11 + $0x204] ss:$28 sps:$4 sm:$0xff]  }
 0x32e   : > { %2578 = vmatpush1.bf16.msra.mxu1 %v3593_v56  ;;  %v3647_v56 = vld [vmem:[%s4820_s11 + $0x1f8] ss:$28 sps:$4 sm:$0xff]  }
 0x32f   : > { %2579 = vmatprep.subr.bf16.mxu1 %v3601_v57  ;;  %v3650_v57 = vld [vmem:[%s4820_s11 + $0x200] ss:$28 sps:$4 sm:$0xff]  }
 0x332   : > { %2580 = vmatpush1.bf16.msra.mxu1 %v3599_v58  ;;  %v3655_v58 = vld [vmem:[%s4820_s11 + $0x1c4] ss:$28 sps:$4 sm:$0xff]  }
 0x333   : > { %2581 = vmatprep.subr.bf16.mxu1 %v3607_v59  ;;  %v3658_v59 = vld [vmem:[%s4820_s11 + $0x1cc] ss:$28 sps:$4 sm:$0xff]  }
 0x336   : > { %2582 = vmatpush1.bf16.msra.mxu1 %v3605_v60  ;;  %v3653_v60 = vld [vmem:[%s4820_s11 + $0x1c0] ss:$28 sps:$4 sm:$0xff]  }
 0x337   : > { %2583 = vmatprep.subr.bf16.mxu1 %v3613_v61  ;;  %v3656_v61 = vld [vmem:[%s4820_s11 + $0x1c8] ss:$28 sps:$4 sm:$0xff]  }
 0x33a   : > { %2584 = vmatpush2.bf16.msra.mxu1 %v3611_v62  ;;  %v3661_v62 = vld [vmem:[%s4820_s11 + $0x19c] ss:$28 sps:$4 sm:$0xff]  }
 0x33b   : > { %2585 = vmatprep.subr.bf16.mxu1 %v3619_v63  ;;  %v3662_v63 = vld [vmem:[%s4820_s11 + $0x360] ss:$28 sps:$4 sm:$0xff]  }
 0x33e   : > { %2586 = vmatpush2.bf16.msra.mxu1 %v3617_v0  ;;  %v1703_v0 = vld [vmem:[%s4819_s10] sm:$0x3] }
 0x33f   : > { %2587 = vmatprep.subr.bf16.mxu1 %v3625_v1 }
 0x342   : > { %2588 = vmatpush2.bf16.msra.mxu1 %v3623_v2  ;;  %v1712_v2 = vrot.slane %v1703_v0, %v4289_v44 }
 0x343   : > { %2589 = vmatprep.subr.bf16.mxu1 %v3631_v3  ;;  %v1708_v3 = vrot.slane %v1703_v0, %v4295_v46  ;;  %v3701_v0 = vld [vmem:[%s4820_s11 + $0x35c] ss:$28 sps:$4 sm:$0xff]  }
 0x346   : > { %2590 = vmatpush2.bf16.msra.mxu1 %v3629_v4 }
 0x347   : > { %2591 = vmatprep.subr.bf16.mxu1 %v3637_v5 }
 0x34a   : > { %2592 = vmatpush2.bf16.msra.mxu1 %v3635_v7 }
 0x34b   : > { %2593 = vmatprep.subr.bf16.mxu1 %v3643_v51  ;;  %v3679_v51 = vld [vmem:[%s4820_s11 + $0xb8] ss:$28 sps:$4 sm:$0xff]  }
 0x34e   : > { %2594 = vmatpush2.bf16.msra.mxu1 %v3641_v49  ;;  %v3686_v49 = vld [vmem:[%s4820_s11 + $0x84] ss:$28 sps:$4 sm:$0xff]  }
 0x34f   : > { %2595 = vmatprep.subr.bf16.mxu1 %v3649_v54  ;;  %v3684_v54 = vld [vmem:[%s4820_s11 + $0x80] ss:$28 sps:$4 sm:$0xff]  }
 0x352   : > { %2596 = vmatpush2.bf16.msra.mxu1 %v3647_v56  ;;  %v3691_v56 = vld [vmem:[%s4820_s11 + $0x4c] ss:$28 sps:$4 sm:$0xff]  }
 0x353   : > { %2597 = vmatprep.subr.bf16.mxu1 %v3655_v58  ;;  %v3689_v58 = vld [vmem:[%s4820_s11 + $0x48] ss:$28 sps:$4 sm:$0xff]  }
 0x356   : > { %2598 = vmatpush2.bf16.msra.mxu1 %v3653_v60  ;;  %v3696_v60 = vld [vmem:[%s4820_s11 + $0x14] ss:$28 sps:$4 sm:$0xff]  }
 0x357   : > { %2673 = vmatprep.subr.bf16.mxu1 %v3661_v62  ;;  %v3694_v62 = vld [vmem:[%s4820_s11 + $0x10] ss:$28 sps:$4 sm:$0xff]  }
 0x3d9   : > { %v3335_v8 = vpop.f32.mrf.mxu1 }
 0x3da   : > { %v1683_v21 = vadd.f32 %v3335_v8, %v3087_v10 }
 0x3db   : > { %v1674_v9 = vpop.f32.mrf.mxu1 }
 0x3dc   : > { %v1675_v12 = vadd.f32 %v3087_v10, %v1674_v9  ;;  %v1691_v25 = vmax.f32 %v1683_v21, 0.0 }
 0x3dd   : > { %v3336_v11 = vpop.f32.mrf.mxu1 }
 0x3de   : > { %v1689_v15 = vmax.f32 %v1675_v12, 0.0  ;;  %v1686_v18 = vadd.f32 %v3336_v11, %v3087_v10 }
 0x3df   : > { %v1677_v13 = vpop.f32.mrf.mxu1 }
 0x3e0   : > { %v1678_v14 = vadd.f32 %v3087_v10, %v1677_v13  ;;  %v1692_v23 = vmax.f32 %v1686_v18, 0.0 }
 0x3e2   : > { %v1690_v16 = vmax.f32 %v1678_v14, 0.0  ;;  %v1694_v27 = vpack.c.bf16 %v1692_v23, %v1691_v25  ;;  %v3666_v23 = vld [vmem:[%s4820_s11 + $0x164] ss:$28 sps:$4 sm:$0xff]  }
 0x3e4   : > { %v1693_v19 = vpack.c.bf16 %v1690_v16, %v1689_v15 }
 0x3e6   : > { %3100 = vmatmul.mubr.msk.bf16.vlgmr.msra.gmra.mxu0 %vm1548_vm1, %v1693_v19  ;;  %v3659_v19 = vld [vmem:[%s4820_s11 + $0x198] ss:$28 sps:$4 sm:$0xff]  }
 0x3e7   : > { %1803 = vmatprep.mubr.bf16.mxu0 %v3785_v6  ;;  %2621 = vmatpush1.bf16.msra.mxu0 %v3566_v17  ;;  %v3586_v6 = vld [vmem:[%s4820_s11 + $0xec] ss:$28 sps:$4 sm:$0xff]  }
 0x3e8   : > { %2622 = vmatprep.subr.bf16.mxu0 %v3574_v20  ;;  %v3663_v20 = vld [vmem:[%s4820_s11 + $0x1a0] ss:$28 sps:$4 sm:$0xff]  }
 0x3eb   : > { %2623 = vmatpush1.bf16.msra.mxu0 %v3572_v22 }
 0x3ec   : > { %2624 = vmatprep.subr.bf16.mxu0 %v3580_v24  ;;  %v3667_v24 = vld [vmem:[%s4820_s11 + $0x328] ss:$28 sps:$4 sm:$0xff]  }
 0x3ee   : > { %3101 = vmatmul.mubr.msk.bf16.gmra.mxu0 %vm1548_vm1, %v1694_v27 }
 0x3ef   : > { %2625 = vmatpush1.bf16.msra.mxu0 %v3578_v26 }
 0x3f0   : > { %2626 = vmatprep.subr.bf16.mxu0 %v3586_v6 }
 0x3f3   : > { %2627 = vmatpush1.bf16.msra.mxu0 %v3584_v28 }
 0x3f4   : > { %2628 = vmatprep.subr.bf16.mxu0 %v3592_v29  ;;  %v3664_v29 = vld [vmem:[%s4820_s11 + $0x160] ss:$28 sps:$4 sm:$0xff]  }
 0x3f7   : > { %2629 = vmatpush1.bf16.msra.mxu0 %v3590_v30  ;;  %v3668_v30 = vld [vmem:[%s4820_s11 + $0x168] ss:$28 sps:$4 sm:$0xff]  }
 0x3f8   : > { %2630 = vmatprep.subr.bf16.mxu0 %v3598_v31 }
 0x3fb   : > { %2631 = vmatpush1.bf16.msra.mxu0 %v3596_v32  ;;  %v3671_v32 = vld [vmem:[%s4820_s11 + $0x12c] ss:$28 sps:$4 sm:$0xff]  }
 0x3fc   : > { %2632 = vmatprep.subr.bf16.mxu0 %v3604_v34  ;;  %v3672_v34 = vld [vmem:[%s4820_s11 + $0x2f0] ss:$28 sps:$4 sm:$0xff]  }
 0x3ff   : > { %2633 = vmatpush1.bf16.msra.mxu0 %v3602_v35 }
 0x400   : > { %2634 = vmatprep.subr.bf16.mxu0 %v3610_v33 }
 0x403   : > { %2635 = vmatpush1.bf16.msra.mxu0 %v3608_v36 }
 0x404   : > { %2636 = vmatprep.subr.bf16.mxu0 %v3616_v37 }
 0x407   : > { %2637 = vmatpush2.bf16.msra.mxu0 %v3614_v38  ;;  %v3669_v38 = vld [vmem:[%s4820_s11 + $0x128] ss:$28 sps:$4 sm:$0xff]  }
 0x408   : > { %2638 = vmatprep.subr.bf16.mxu0 %v3622_v39  ;;  %v3673_v39 = vld [vmem:[%s4820_s11 + $0x130] ss:$28 sps:$4 sm:$0xff]  }
 0x40b   : > { %2639 = vmatpush2.bf16.msra.mxu0 %v3620_v41 }
 0x40c   : > { %2640 = vmatprep.subr.bf16.mxu0 %v3628_v42  ;;  %v3676_v42 = vld [vmem:[%s4820_s11 + $0xf4] ss:$28 sps:$4 sm:$0xff]  }
 0x40f   : > { %2641 = vmatpush2.bf16.msra.mxu0 %v3626_v43  ;;  %v3677_v43 = vld [vmem:[%s4820_s11 + $0x2b8] ss:$28 sps:$4 sm:$0xff]  }
 0x410   : > { %2642 = vmatprep.subr.bf16.mxu0 %v3634_v45  ;;  %v3674_v45 = vld [vmem:[%s4820_s11 + $0xf0] ss:$28 sps:$4 sm:$0xff]  }
 0x413   : > { %2643 = vmatpush2.bf16.msra.mxu0 %v3632_v47  ;;  %v3678_v47 = vld [vmem:[%s4820_s11 + $0xf8] ss:$28 sps:$4 sm:$0xff]  }
 0x414   : > { %2644 = vmatprep.subr.bf16.mxu0 %v3640_v48  ;;  %v3681_v48 = vld [vmem:[%s4820_s11 + $0xbc] ss:$28 sps:$4 sm:$0xff]  }
 0x417   : > { %2645 = vmatpush2.bf16.msra.mxu0 %v3638_v50  ;;  %v3682_v50 = vld [vmem:[%s4820_s11 + $0x280] ss:$28 sps:$4 sm:$0xff]  }
 0x418   : > { %2646 = vmatprep.subr.bf16.mxu0 %v3646_v52  ;;  %v3683_v52 = vld [vmem:[%s4820_s11 + $0xc0] ss:$28 sps:$4 sm:$0xff]  }
 0x41b   : > { %2647 = vmatpush2.bf16.msra.mxu0 %v3644_v53  ;;  %v3687_v53 = vld [vmem:[%s4820_s11 + $0x248] ss:$28 sps:$4 sm:$0xff]  }
 0x41c   : > { %2648 = vmatprep.subr.bf16.mxu0 %v3652_v55  ;;  %v3688_v55 = vld [vmem:[%s4820_s11 + $0x88] ss:$28 sps:$4 sm:$0xff]  }
 0x41f   : > { %2649 = vmatpush2.bf16.msra.mxu0 %v3650_v57  ;;  %v3692_v57 = vld [vmem:[%s4820_s11 + $0x210] ss:$28 sps:$4 sm:$0xff]  }
 0x420   : > { %2650 = vmatprep.subr.bf16.mxu0 %v3658_v59  ;;  %v3693_v59 = vld [vmem:[%s4820_s11 + $0x50] ss:$28 sps:$4 sm:$0xff]  }
 0x423   : > { %2651 = vmatpush2.bf16.msra.mxu0 %v3656_v61  ;;  %v3697_v61 = vld [vmem:[%s4820_s11 + $0x1d8] ss:$28 sps:$4 sm:$0xff]  }
 0x424   : > { %3289 = vmatprep.subr.bf16.mxu0 %v3662_v63  ;;  %v3698_v63 = vld [vmem:[%s4820_s11 + $0x18] ss:$28 sps:$4 sm:$0xff]  }
 0x4a6   : > { %v1795_v1 = vpop.f32.mrf.mxu0 }
 0x4a7   : > { %v1796_v9 = vadd.f32 %v1795_v1, %v1708_v3  ;;  %v3699_v1 = vld [vmem:[%s4820_s11 + $0x358] ss:$28 sps:$4 sm:$0xff]  }
 0x4a8   : > { %v1797_v4 = vpop.f32.mrf.mxu0 }
 0x4a9   : > { %v1798_v7 = vadd.f32 %v1797_v4, %v1712_v2  ;;  %v1814_v16 = vmax.f32 %v1796_v9, 0.0  ;;  %v3707_v4 = vld [vmem:[%s4820_s11 + $0x2ec] ss:$28 sps:$4 sm:$0xff]   ;;  %v3713_v9 = vld [vmem:[%s4820_s11 + $0x27c] ss:$28 sps:$4 sm:$0xff]  }
 0x4aa   : > { %v1799_v5 = vpop.f32.mrf.mxu0 }
 0x4ab   : > { %v1800_v8 = vadd.f32 %v1799_v5, %v1708_v3  ;;  %v1815_v14 = vmax.f32 %v1798_v7, 0.0  ;;  %v3705_v5 = vld [vmem:[%s4820_s11 + $0x2e8] ss:$28 sps:$4 sm:$0xff]   ;;  %v3710_v7 = vld [vmem:[%s4820_s11 + $0x2b4] ss:$28 sps:$4 sm:$0xff]  }
 0x4ac   : > { %v1801_v10 = vpop.f32.mrf.mxu0 }
 0x4ad   : > { %v1802_v11 = vadd.f32 %v1801_v10, %v1712_v2  ;;  %v1816_v12 = vmax.f32 %v1800_v8, 0.0  ;;  %v3708_v8 = vld [vmem:[%s4820_s11 + $0x2b0] ss:$28 sps:$4 sm:$0xff]   ;;  %v3711_v10 = vld [vmem:[%s4820_s11 + $0x278] ss:$28 sps:$4 sm:$0xff]  }
 0x4ae   : > { %v1805_v13 = vpop.f32.mrf.mxu0 }
 0x4af   : > { %v1817_v15 = vmax.f32 %v1802_v11, 0.0  ;;  %v4564_v21 = vpack.c.bf16 %v1816_v12, %v1814_v16  ;;  %v1806_v27 = vadd.f32 %v1805_v13, %v1708_v3  ;;  %v3716_v11 = vld [vmem:[%s4820_s11 + $0x244] ss:$28 sps:$4 sm:$0xff]   ;;  %v3719_v13 = vld [vmem:[%s4820_s11 + $0x20c] ss:$28 sps:$4 sm:$0xff]  }
 0x4b0   : > { %v1807_v17 = vpop.f32.mrf.mxu0  ;;  %v3714_v12 = vld [vmem:[%s4820_s11 + $0x240] ss:$28 sps:$4 sm:$0xff]   ;;  %v3720_v16 = vld [vmem:[%s4820_s11 + $0x1d0] ss:$28 sps:$4 sm:$0xff]  }
 0x4b1   : > { %v1823_v18 = vpack.c.bf16 %v1817_v15, %v1815_v14  ;;  %v1808_v25 = vadd.f32 %v1807_v17, %v1712_v2  ;;  %v1818_v36 = vmax.f32 %v1806_v27, 0.0  ;;  %v3717_v14 = vld [vmem:[%s4820_s11 + $0x208] ss:$28 sps:$4 sm:$0xff]   ;;  %v3722_v15 = vld [vmem:[%s4820_s11 + $0x1d4] ss:$28 sps:$4 sm:$0xff]   ;;  %v1966_v17 = vsub.s32 2, %v4286_v40 }
 0x4b2   : > { %v1809_v22 = vpop.f32.mrf.mxu0 }
 0x4b3   : > { %v1810_v26 = vadd.f32 %v1809_v22, %v1708_v3  ;;  %2599 = vmatprep.mubr.bf16.mxu1 %v1823_v18  ;;  %2652 = vmatprep.mubr.bf16.mxu0 %v1823_v18  ;;  %v1819_v35 = vmax.f32 %v1808_v25, 0.0  ;;  %v3702_v3 = vld [vmem:[%s4820_s11 + $0x320] ss:$28 sps:$4 sm:$0xff]  }
 0x4b4   : > { %v1811_v6 = vpop.f32.mrf.mxu0  ;;  %2600 = vmatmul.mubr.bf16.vlgmr.msra.gmra.mxu1 %v4564_v21  ;;  %2653 = vmatmul.mubr.bf16.vlgmr.msra.gmra.mxu0 %v4564_v21 }
 0x4b5   : > { %v1812_v28 = vadd.f32 %v1811_v6, %v1712_v2  ;;  %2674 = vmatpush1.bf16.msra.mxu1 %v3659_v19  ;;  %3290 = vmatpush3.bf16.msra.mxu0 %v3663_v20  ;;  %v1820_v31 = vmax.f32 %v1810_v26, 0.0  ;;  %v3704_v2 = vld [vmem:[%s4820_s11 + $0x324] ss:$28 sps:$4 sm:$0xff]  }
 0x4b6   : > { %2675 = vmatprep.subr.bf16.mxu1 %v3666_v23  ;;  %3291 = vmatprep.subr.bf16.mxu0 %v3667_v24  ;;  %v4719_v19 = vld [vmem:[%s4821_s12] sm:$0x7f] }
 0x4b7   : > { %v1821_v33 = vmax.f32 %v1812_v28, 0.0  ;;  %v4594_v41 = vpack.c.bf16 %v1820_v31, %v1818_v36  ;;  %v1959_v20 = vrot.slane %v4719_v19, %v4295_v46  ;;  %v1967_v22 = vrot.slane %v4719_v19, %v1966_v17 }
 0x4b9   : > { %v4586_v37 = vpack.c.bf16 %v1821_v33, %v1819_v35  ;;  %2676 = vmatpush1.bf16.msra.mxu1 %v3664_v29  ;;  %3292 = vmatpush3.bf16.msra.mxu0 %v3668_v30 }
 0x4ba   : > { %2677 = vmatprep.subr.bf16.mxu1 %v3671_v32  ;;  %3293 = vmatprep.subr.bf16.mxu0 %v3672_v34 }
 0x4bb   : > { %2609 = vmatprep.mubr.bf16.mxu1 %v4586_v37  ;;  %2662 = vmatprep.mubr.bf16.mxu0 %v4586_v37 }
 0x4bc   : > { %2610 = vmatmul.mubr.bf16.gmra.mxu1 %v4594_v41  ;;  %2663 = vmatmul.mubr.bf16.gmra.mxu0 %v4594_v41 }
 0x4bd   : > { %2678 = vmatpush1.bf16.msra.mxu1 %v3669_v38  ;;  %3294 = vmatpush3.bf16.msra.mxu0 %v3673_v39 }
 0x4be   : > { %2705 = vmatprep.mubr.bf16.mxu1 %v1823_v18  ;;  %2758 = vmatprep.mubr.bf16.mxu0 %v1823_v18  ;;  %v1970_v18 = vsub.s32 3, %v4286_v40 }
 0x4bf   : > { %2679 = vmatprep.subr.bf16.mxu1 %v3676_v42  ;;  %3295 = vmatprep.subr.bf16.mxu0 %v3677_v43 }
 0x4c0   : > { %v1971_v23 = vrot.slane %v4719_v19, %v1970_v18 }
 0x4c1   : > { %2680 = vmatpush1.bf16.msra.mxu1 %v3674_v45  ;;  %3296 = vmatpush3.bf16.msra.mxu0 %v3678_v47 }
 0x4c2   : > { %2681 = vmatprep.subr.bf16.mxu1 %v3681_v48  ;;  %3297 = vmatprep.subr.bf16.mxu0 %v3682_v50 }
 0x4c5   : > { %2682 = vmatpush1.bf16.msra.mxu1 %v3679_v51  ;;  %3298 = vmatpush3.bf16.msra.mxu0 %v3683_v52 }
 0x4c6   : > { %2683 = vmatprep.subr.bf16.mxu1 %v3686_v49  ;;  %3299 = vmatprep.subr.bf16.mxu0 %v3687_v53 }
 0x4c9   : > { %2684 = vmatpush1.bf16.msra.mxu1 %v3684_v54  ;;  %3300 = vmatpush3.bf16.msra.mxu0 %v3688_v55 }
 0x4ca   : > { %2685 = vmatprep.subr.bf16.mxu1 %v3691_v56  ;;  %3301 = vmatprep.subr.bf16.mxu0 %v3692_v57 }
 0x4cd   : > { %2686 = vmatpush1.bf16.msra.mxu1 %v3689_v58  ;;  %3302 = vmatpush3.bf16.msra.mxu0 %v3693_v59 }
 0x4ce   : > { %2687 = vmatprep.subr.bf16.mxu1 %v3696_v60  ;;  %3303 = vmatprep.subr.bf16.mxu0 %v3697_v61 }
 0x4d1   : > { %2688 = vmatpush1.bf16.msra.mxu1 %v3694_v62  ;;  %3304 = vmatpush3.bf16.msra.mxu0 %v3698_v63 }
 0x4d2   : > { %2689 = vmatprep.subr.bf16.mxu1 %v3701_v0  ;;  %v1982_v0 = vsub.s32 6, %v4286_v40 }
 0x4d4   : > { %2759 = vmatmul.mubr.bf16.vlgmr.msra.gmra.mxu0 %v4564_v21 }
 0x4d5   : > { %2690 = vmatpush2.bf16.msra.mxu1 %v3699_v1  ;;  %2766 = vmatprep.mubr.bf16.mxu0 %v4586_v37 }
 0x4d6   : > { %2691 = vmatprep.subr.bf16.mxu1 %v3704_v2  ;;  %v1983_v2 = vrot.slane %v4719_v19, %v1982_v0 }
 0x4d9   : > { %2692 = vmatpush2.bf16.msra.mxu1 %v3702_v3 }
 0x4da   : > { %2693 = vmatprep.subr.bf16.mxu1 %v3707_v4 }
 0x4dc   : > { %2767 = vmatmul.mubr.bf16.gmra.mxu0 %v4594_v41 }
 0x4dd   : > { %2694 = vmatpush2.bf16.msra.mxu1 %v3705_v5 }
 0x4de   : > { %2695 = vmatprep.subr.bf16.mxu1 %v3710_v7 }
 0x4e1   : > { %2696 = vmatpush2.bf16.msra.mxu1 %v3708_v8 }
 0x4e2   : > { %2697 = vmatprep.subr.bf16.mxu1 %v3713_v9 }
 0x4e5   : > { %2698 = vmatpush2.bf16.msra.mxu1 %v3711_v10 }
 0x4e6   : > { %2699 = vmatprep.subr.bf16.mxu1 %v3716_v11 }
 0x4e9   : > { %2700 = vmatpush2.bf16.msra.mxu1 %v3714_v12 }
 0x4ea   : > { %2701 = vmatprep.subr.bf16.mxu1 %v3719_v13 }
 0x4ed   : > { %2702 = vmatpush2.bf16.msra.mxu1 %v3717_v14 }
 0x4ee   : > { %2703 = vmatprep.subr.bf16.mxu1 %v3722_v15 }
 0x4f1   : > { %2704 = vmatpush2.bf16.msra.mxu1 %v3720_v16 }
 0x4f4   : > { %2706 = vmatmul.mubr.bf16.vlgmr.msra.gmra.mxu1 %v4564_v21  ;;  %v1963_v21 = vrot.slane %v4719_v19, %v4289_v44 }
 0x4f5   : > { %2715 = vmatprep.mubr.bf16.mxu1 %v4586_v37 }
 0x4fc   : > { %2716 = vmatmul.mubr.bf16.gmra.mxu1 %v4594_v41 }
 0x574   : > { %v2601_v24 = vpop.f32.mrf.mxu1  ;;  %v2654_v25 = vpop.f32.mrf.mxu0 }
 0x575   : > { %v2602_v6 = vadd.f32 %v2601_v24, %v1959_v20  ;;  %v2655_v28 = vadd.f32 %v2654_v25, %v1967_v22  ;;  %v1974_v24 = vsub.s32 4, %v4286_v40  ;;  %v1978_v25 = vsub.s32 5, %v4286_v40 }
 0x576   : > { %v2603_v26 = vpop.f32.mrf.mxu1  ;;  %v2656_v27 = vpop.f32.mrf.mxu0 }
 0x577   : > { %v2604_v29 = vadd.f32 %v2603_v26, %v1963_v21  ;;  %v2657_v30 = vadd.f32 %v2656_v27, %v1971_v23  ;;  %v1975_v26 = vrot.slane %v4719_v19, %v1974_v24  ;;  %v1979_v27 = vrot.slane %v4719_v19, %v1978_v25 }
 0x578   : > { %v2605_v31 = vpop.f32.mrf.mxu1  ;;  %v2658_v32 = vpop.f32.mrf.mxu0 }
 0x579   : > { %v3235_v46 = vpack.c.bf16 %v2604_v29, %v2602_v6  ;;  %v3236_v34 = vpack.c.bf16 %v2657_v30, %v2655_v28  ;;  %v2606_v44 = vadd.f32 %v2605_v31, %v1959_v20  ;;  %v2659_v36 = vadd.f32 %v2658_v32, %v1967_v22 }
 0x57a   : > { %v2607_v35 = vpop.f32.mrf.mxu1  ;;  %v2660_v33 = vpop.f32.mrf.mxu0 }
 0x57b   : > { %2863 = vst [vmem:[%s4730_s23] sm:$0xff] %v3235_v46  ;;  %2864 = vst [vmem:[%s4730_s23 + $0x8] sm:$0xff] %v3236_v34  ;;  %v2608_v37 = vadd.f32 %v2607_v35, %v1963_v21  ;;  %v2661_v38 = vadd.f32 %v2660_v33, %v1971_v23 }
 0x57c   : > { %v2611_v39 = vpop.f32.mrf.mxu1  ;;  %v2664_v41 = vpop.f32.mrf.mxu0 }
 0x57d   : > { %v3239_v42 = vpack.c.bf16 %v2608_v37, %v2606_v44  ;;  %v3240_v43 = vpack.c.bf16 %v2661_v38, %v2659_v36  ;;  %v2612_v48 = vadd.f32 %v2611_v39, %v1959_v20  ;;  %v2665_v50 = vadd.f32 %v2664_v41, %v1967_v22 }
 0x57e   : > { %v2613_v45 = vpop.f32.mrf.mxu1  ;;  %v2666_v47 = vpop.f32.mrf.mxu0 }
 0x57f   : > { %2868 = vst [vmem:[%s4730_s23 + $0x1c] sm:$0xff] %v3239_v42  ;;  %2869 = vst [vmem:[%s4730_s23 + $0x24] sm:$0xff] %v3240_v43  ;;  %v2614_v51 = vadd.f32 %v2613_v45, %v1963_v21  ;;  %v2667_v52 = vadd.f32 %v2666_v47, %v1971_v23 }
 0x580   : > { %v2615_v49 = vpop.f32.mrf.mxu1  ;;  %v2668_v53 = vpop.f32.mrf.mxu0 }
 0x581   : > { %v3243_v54 = vpack.c.bf16 %v2614_v51, %v2612_v48  ;;  %v3244_v55 = vpack.c.bf16 %v2667_v52, %v2665_v50  ;;  %v2616_v58 = vadd.f32 %v2615_v49, %v1959_v20  ;;  %v2669_v59 = vadd.f32 %v2668_v53, %v1967_v22 }
 0x582   : > { %v2617_v56 = vpop.f32.mrf.mxu1  ;;  %v2670_v57 = vpop.f32.mrf.mxu0 }
 0x583   : > { %2872 = vst [vmem:[%s4730_s23 + $0x38] sm:$0xff] %v3243_v54  ;;  %2873 = vst [vmem:[%s4730_s23 + $0x40] sm:$0xff] %v3244_v55  ;;  %v2618_v60 = vadd.f32 %v2617_v56, %v1963_v21  ;;  %v2671_v61 = vadd.f32 %v2670_v57, %v1971_v23 }
 0x585   : > { %v3247_v62 = vpack.c.bf16 %v2618_v60, %v2616_v58  ;;  %v3248_v63 = vpack.c.bf16 %v2671_v61, %v2669_v59 }
 0x587   : > { %2876 = vst [vmem:[%s4730_s23 + $0x54] sm:$0xff] %v3247_v62  ;;  %2877 = vst [vmem:[%s4730_s23 + $0x5c] sm:$0xff] %v3248_v63 }
 0x594   : > { %v3305_v1 = vpop.f32.mrf.mxu0 }
 0x596   : > { %v3306_v3 = vpop.f32.mrf.mxu0 }
 0x597   : > { %v3307_v4 = vadd.f32 %v3306_v3, %v3305_v1 }
 0x598   : > { %v3308_v5 = vpop.f32.mrf.mxu0 }
 0x599   : > { %v2761_v7 = vadd.f32 %v3307_v4, %v1983_v2 }
 0x59a   : > { %v3309_v8 = vpop.f32.mrf.mxu0 }
 0x59b   : > { %v3238_v9 = vpack.c.bf16 %v2761_v7, %v2761_v7  ;;  %v3310_v10 = vadd.f32 %v3309_v8, %v3308_v5 }
 0x59c   : > { %v3311_v11 = vpop.f32.mrf.mxu0 }
 0x59d   : > { %2867 = vst.msk [vmem:[%s4730_s23 + $0x18] sm:$0xf] %vm2866_vm3, %v3238_v9  ;;  %v2764_v12 = vadd.f32 %v3310_v10, %v1983_v2 }
 0x59e   : > { %v3312_v13 = vpop.f32.mrf.mxu0 }
 0x59f   : > { %v3242_v14 = vpack.c.bf16 %v2764_v12, %v2764_v12  ;;  %v3313_v15 = vadd.f32 %v3312_v13, %v3311_v11 }
 0x5a0   : > { %v3314_v16 = vpop.f32.mrf.mxu0 }
 0x5a1   : > { %2871 = vst.msk [vmem:[%s4730_s23 + $0x34] sm:$0xf] %vm2866_vm3, %v3242_v14  ;;  %v2769_v17 = vadd.f32 %v3313_v15, %v1983_v2 }
 0x5a2   : > { %v3315_v18 = vpop.f32.mrf.mxu0 }
 0x5a3   : > { %v3246_v20 = vpack.c.bf16 %v2769_v17, %v2769_v17  ;;  %v3316_v22 = vadd.f32 %v3315_v18, %v3314_v16 }
 0x5a5   : > { %2875 = vst.msk [vmem:[%s4730_s23 + $0x50] sm:$0xf] %vm2866_vm3, %v3246_v20  ;;  %v2772_v21 = vadd.f32 %v3316_v22, %v1983_v2 }
 0x5a7   : > { %v3250_v23 = vpack.c.bf16 %v2772_v21, %v2772_v21 }
 0x5a9   : > { %2879 = vst.msk [vmem:[%s4730_s23 + $0x6c] sm:$0xf] %vm2866_vm3, %v3250_v23 }
 0x5b4   : > { %v2707_v6 = vpop.f32.mrf.mxu1 }
 0x5b5   : > { %v2708_v29 = vadd.f32 %v2707_v6, %v1975_v26 }
 0x5b6   : > { %v2709_v28 = vpop.f32.mrf.mxu1 }
 0x5b7   : > { %v2710_v30 = vadd.f32 %v2709_v28, %v1979_v27 }
 0x5b8   : > { %v2711_v31 = vpop.f32.mrf.mxu1 }
 0x5b9   : > { %v3237_v32 = vpack.c.bf16 %v2710_v30, %v2708_v29  ;;  %v2712_v34 = vadd.f32 %v2711_v31, %v1975_v26 }
 0x5ba   : > { %v2713_v46 = vpop.f32.mrf.mxu1 }
 0x5bb   : > { %2865 = vst [vmem:[%s4730_s23 + $0x10] sm:$0xff] %v3237_v32  ;;  %v2714_v35 = vadd.f32 %v2713_v46, %v1979_v27 }
 0x5bc   : > { %v2717_v33 = vpop.f32.mrf.mxu1 }
 0x5bd   : > { %v3241_v40 = vpack.c.bf16 %v2714_v35, %v2712_v34  ;;  %v2718_v19 = vadd.f32 %v2717_v33, %v1975_v26 }
 0x5be   : > { %v2719_v44 = vpop.f32.mrf.mxu1 }
 0x5bf   : > { %2870 = vst [vmem:[%s4730_s23 + $0x2c] sm:$0xff] %v3241_v40  ;;  %v2720_v36 = vadd.f32 %v2719_v44, %v1979_v27 }
 0x5c0   : > { %v2721_v37 = vpop.f32.mrf.mxu1 }
 0x5c1   : > { %v3245_v38 = vpack.c.bf16 %v2720_v36, %v2718_v19  ;;  %v2722_v41 = vadd.f32 %v2721_v37, %v1975_v26 }
 0x5c2   : > { %v2723_v39 = vpop.f32.mrf.mxu1 }
 0x5c3   : > { %2874 = vst [vmem:[%s4730_s23 + $0x48] sm:$0xff] %v3245_v38  ;;  %v2724_v42 = vadd.f32 %v2723_v39, %v1979_v27 }
 0x5c5   : > { %v3249_v43 = vpack.c.bf16 %v2724_v42, %v2722_v41 }
 0x5c7   : > { %2878 = vst [vmem:[%s4730_s23 + $0x64] sm:$0xff] %v3249_v43 }
 0x5c8   : > { %3736 = shalt.err (!%p3733_p3)
}
 0x5c9   : > { %s3737_s20 = scalar_lea.hbm %s4762_s21, 1792  ;;  %s3741_s16 = scalar_lea.hbm %s4822_s13, 3584 }
 0x5ca   : > { %p3738_p4 = scmp.ne.s32.totalorder %s4762_s21, %s3737_s20  ;;  %p3742_p9 = scmp.lt.s32.totalorder %s4762_s21, %s4822_s13 }
 0x5cb   : > { %p3743_p10 = scmp.lt.s32.totalorder %s3741_s16, %s3737_s20 }
 0x5cc   : > { %p3739_p7 = pnand %p3738_p4, %p3897_p5 }
 0x5cd   : > { %p3744_p11 = por %p3743_p10, %p3742_p9 }
 0x5ce   : > { %p3740_p8 = pneg %p3739_p7 }
 0x5d0   : > { %p3745_p12 = pnand %p3744_p11, %p3740_p8 }
 0x5d2   : > { %3748 = shalt.err (!%p3745_p12)
}
 0x5d3   : > { %s3787_s14 = smov 448   ;;  %s3788_s15 = smov 28  }
 0x5d4   : > { %3340 = dma.vmem_to_hbm [thread:$0]  (%p3897_p5), %s4764_s30, 1792, %s4762_s21, %s4769_s29, %s3787_s14, %s3787_s14, %s3788_s15  }
 0x5d5 PF: > { %p3346_p13 = scmp.ge.s32.totalorder %s3783_s28, 2  ;;  %s2910_s22 = sand.u32 1, %s3771_s25  }
 0x5d6   : > { %s2911_s20 = scalar_lea.sflag [#allocation3], %s2910_s22 }
 0x5d7   : > { %p3343_p0 = pnand %p3346_p13, %p3901_p6 }
 0x5d9   : > { %p3344_p1 = pneg %p3343_p0 }
 0x5db   : > { %3766 = dma.done.wait (%p3344_p1), %s2911_s20, 1792  }
 0x5dc   : > { %3768 = vsyncadd (%p3344_p1), %s2911_s20, 4294965504  ;;  %s4831_s28 = sld [smem:[#allocation6_spill]]  ;;  %s4834_s25 = smov %s3775_s26 }
 0x5dd   : > { %s4832_s23 = sld [smem:[#allocation5_spill]] }
 0x5de   : > { %s4833_s27 = sld [smem:[#allocation7_spill]] }
 0x5e2   : > { %p23_p2 = scmp.ge.s32.totalorder %s4831_s28, 4  }
 0x5e3   : > { %s4835_s26 = smov %s4832_s23 }
 0x5e4   :  { %25 = sbr.rel (!%p23_p2) target bundleno = 3 (0x3), region = 107 }
 0x5e9   :  { %2916 = vsyncpa [#allocation3], 1 }
 0x5ea   :  { %2918 = vsyncpa [#allocation3 + $0x1], 1 }

</bundles_post_ra>
